<compile_context>
chip_gen: v7x
topology: tpu7x:2x2x1
jax: 0.10.0
libtpu: 0.0.40
codegen_flags: <defaults>
</compile_context>

<pallas_src>
import math
import functools

import jax
import jax.numpy as jnp
from jax.experimental import pallas as pl
from jax.experimental.pallas import tpu as pltpu


_BBOX_XFORM_CLIP = math.log(1000.0 / 16.0)


# ----------------------------------------------------------------------------
# Pallas kernel: fused RPN head (3x3 conv + ReLU + cls/bbox 1x1) + box decode
# ----------------------------------------------------------------------------
def _head_decode_kernel(tH, W, Wp, Cin, Cmid, A, img_w, img_h, bbox_clip,
                        xc_ref, xt_ref, xb_ref, wconv_ref, bconv_ref,
                        whead_ref, bhead_ref, anc_ref,
                        scores_ref, boxes_ref, xbuf_ref):
    # Assemble the haloed (tH+2, Wp, Cin) input window in VMEM scratch:
    # one row of top halo, tH centre rows, one row of bottom halo.
    xbuf_ref[0:1] = xt_ref[0]
    xbuf_ref[1:tH + 1] = xc_ref[0]
    xbuf_ref[tH + 1:tH + 2] = xb_ref[0]
    x = xbuf_ref[...]                                   # (tH+2, Wp, Cin) bf16

    rows = tH * W
    # 3x3 "same" conv as 9 shifted matmuls, bf16 inputs, f32 accumulation.
    acc = jnp.zeros((rows, Cmid), jnp.float32)
    for k in range(9):
        dy, dx = divmod(k, 3)
        xs = x[dy:dy + tH, dx:dx + W, :].reshape(rows, Cin)
        acc = acc + jnp.dot(xs, wconv_ref[k],
                            preferred_element_type=jnp.float32)
    hidden = jnp.maximum(acc + bconv_ref[...], 0.0).astype(jnp.bfloat16)

    # Fused cls | bbox 1x1 conv: one (rows, Cmid) x (Cmid, 5*A) matmul.
    # Column layout: [cls(A) | tx(A) | ty(A) | tw(A) | th(A)] (coordinate-major).
    z = jnp.dot(hidden, whead_ref[...],
                preferred_element_type=jnp.float32) + bhead_ref[...]

    cls = z[:, 0:A]
    t_ctr = z[:, A:3 * A]                                 # [tx | ty]
    t_wh = jnp.minimum(z[:, 3 * A:5 * A], bbox_clip)      # [tw | th]

    # Anchors arrive precomputed coordinate-major: [acx(A)|acy(A)|aw(A)|ah(A)].
    anc = anc_ref[...].reshape(rows, 4 * A)
    a_ctr = anc[:, 0:2 * A]
    a_wh = anc[:, 2 * A:4 * A]

    # BoxCoder.decode with weights (1, 1, 1, 1), x & y lanes processed together.
    p_ctr = t_ctr * a_wh + a_ctr
    p_wh = jnp.exp(t_wh) * a_wh
    half = 0.5 * p_wh

    # clip_boxes_to_image: x-lanes clip to img_w, y-lanes clip to img_h.
    col = jax.lax.broadcasted_iota(jnp.int32, (1, 2 * A), 1)
    bound = jnp.where(col < A, img_w, img_h).astype(jnp.float32)
    lo = jnp.minimum(jnp.maximum(p_ctr - half, 0.0), bound)   # [x1 | y1]
    hi = jnp.minimum(jnp.maximum(p_ctr + half, 0.0), bound)   # [x2 | y2]

    # sigmoid via EUP exp + approx reciprocal.
    scores_ref[0] = pl.reciprocal(1.0 + jnp.exp(-cls), approx=True)
    boxes_ref[0, 0] = lo[:, 0:A]
    boxes_ref[0, 1] = lo[:, A:2 * A]
    boxes_ref[0, 2] = hi[:, 0:A]
    boxes_ref[0, 3] = hi[:, A:2 * A]


def _pick_row_tile(H, W, max_rows):
    """Largest divisor of H (<= max_rows) whose tile keeps BlockSpecs legal."""
    for t in range(min(H, max_rows), 0, -1):
        if H % t == 0 and ((t * W) % 8 == 0 or t == H):
            return t
    return H


def _row_halos(x_padw, tH):
    """Per-tile one-row top/bottom halos of the W-padded NHWC feature map."""
    N, H, Wp, Cin = x_padw.shape
    nT = H // tH
    zero = jnp.zeros((N, 1, Wp, Cin), x_padw.dtype)
    if nT == 1:
        return zero, zero
    top_rows = x_padw[:, tH - 1:H - 1:tH]       # rows t*tH - 1 for t = 1..nT-1
    bot_rows = x_padw[:, tH:H:tH]               # rows (t+1)*tH for t = 0..nT-2
    top = jnp.concatenate([zero, top_rows], axis=1)
    bot = jnp.concatenate([bot_rows, zero], axis=1)
    return top, bot


def rpn_head_decode_level(x_nchw, w_conv, b_conv, w_head, b_head, anchors_ctr,
                          A, img_size, max_rows_per_tile=128):
    """Fused head + decode for one level.

    Returns:
      scores:  (N, H*W*A) sigmoid objectness, (h, w, a) ordering.
      boxes:   (N, 4, H*W*A) decoded + clipped boxes, coordinate-major.
    """
    N, Cin, H, W = x_nchw.shape
    Cmid = w_conv.shape[-1]
    C5 = 5 * A
    tH = _pick_row_tile(H, W, max_rows_per_tile)
    nT = H // tH
    Wp = W + 2

    # NCHW -> NHWC, bf16, pad W only (H boundary comes from the halo inputs).
    x = jnp.transpose(x_nchw, (0, 2, 3, 1)).astype(jnp.bfloat16)
    x_padw = jnp.pad(x, ((0, 0), (0, 0), (1, 1), (0, 0)))
    top, bot = _row_halos(x_padw, tH)

    kernel = functools.partial(
        _head_decode_kernel, tH, W, Wp, Cin, Cmid, A,
        float(img_size[1]), float(img_size[0]), _BBOX_XFORM_CLIP)

    scores, boxes_cm = pl.pallas_call(
        kernel,
        out_shape=(jax.ShapeDtypeStruct((N, H * W, A), jnp.float32),
                   jax.ShapeDtypeStruct((N, 4, H * W, A), jnp.float32)),
        grid_spec=pltpu.PrefetchScalarGridSpec(
            num_scalar_prefetch=0,
            grid=(N, nT),
            in_specs=[
                pl.BlockSpec((1, tH, Wp, Cin), lambda n, t: (n, t, 0, 0)),
                pl.BlockSpec((1, 1, Wp, Cin), lambda n, t: (n, t, 0, 0)),
                pl.BlockSpec((1, 1, Wp, Cin), lambda n, t: (n, t, 0, 0)),
                pl.BlockSpec((9, Cin, Cmid), lambda n, t: (0, 0, 0)),
                pl.BlockSpec((1, Cmid), lambda n, t: (0, 0)),
                pl.BlockSpec((Cmid, C5), lambda n, t: (0, 0)),
                pl.BlockSpec((1, C5), lambda n, t: (0, 0)),
                pl.BlockSpec((tH, W, 4 * A), lambda n, t: (t, 0, 0)),
            ],
            out_specs=[
                pl.BlockSpec((1, tH * W, A), lambda n, t: (n, t, 0)),
                pl.BlockSpec((1, 4, tH * W, A), lambda n, t: (n, 0, t, 0)),
            ],
            scratch_shapes=[pltpu.VMEM((tH + 2, Wp, Cin), jnp.bfloat16)]),
        compiler_params=pltpu.CompilerParams(
            dimension_semantics=("parallel", "parallel"),
            vmem_limit_bytes=32 * 1024 * 1024),
    )(x_padw, top, bot, w_conv, b_conv, w_head, b_head, anchors_ctr)

    return scores.reshape(N, H * W * A), boxes_cm.reshape(N, 4, H * W * A)


# ----------------------------------------------------------------------------
# Parameter / anchor preparation (plain JAX, tiny)
# ----------------------------------------------------------------------------
def _prep_params(params, A):
    """Fuse cls|bbox weights and reorder bbox channels to coordinate-major."""
    Cmid = params["w_conv"].shape[-1]
    w_conv = params["w_conv"].astype(jnp.bfloat16)                 # (9,Cin,Cmid)
    b_conv = params["b_conv"].reshape(1, Cmid).astype(jnp.float32)
    # torch bbox head channel order is anchor-major groups of 4 (a*4 + c);
    # reorder columns to coordinate-major (c*A + a) for the fused decode.
    w_box_cm = params["w_box"].reshape(Cmid, A, 4).transpose(0, 2, 1)
    w_box_cm = w_box_cm.reshape(Cmid, 4 * A)
    b_box_cm = params["b_box"].reshape(A, 4).T.reshape(4 * A)
    w_head = jnp.concatenate([params["w_cls"], w_box_cm],
                             axis=1).astype(jnp.bfloat16)          # (Cmid, 5A)
    b_head = jnp.concatenate([params["b_cls"].reshape(A), b_box_cm])
    b_head = b_head.reshape(1, 5 * A).astype(jnp.float32)
    return w_conv, b_conv, w_head, b_head


def generate_cell_anchors(sizes, aspect_ratios):
    sizes = jnp.asarray(sizes, jnp.float32)
    ratios = jnp.asarray(aspect_ratios, jnp.float32)
    h_ratios = jnp.sqrt(ratios)
    w_ratios = 1.0 / h_ratios
    ws = (w_ratios[:, None] * sizes[None, :]).reshape(-1)
    hs = (h_ratios[:, None] * sizes[None, :]).reshape(-1)
    base = jnp.stack([-ws, -hs, ws, hs], axis=1) / 2.0
    return jnp.round(base)  # (A, 4)


def _grid_anchor_grid(H, W, stride_h, stride_w, cell):
    sx = jnp.arange(W, dtype=jnp.float32) * stride_w
    sy = jnp.arange(H, dtype=jnp.float32) * stride_h
    shift_x = jnp.broadcast_to(sx[None, :], (H, W))
    shift_y = jnp.broadcast_to(sy[:, None], (H, W))
    shifts = jnp.stack([shift_x, shift_y, shift_x, shift_y], axis=-1)  # (H,W,4)
    return shifts[:, :, None, :] + cell[None, None, :, :]             # (H,W,A,4)


def grid_anchors_ctr_cm(H, W, stride_h, stride_w, cell):
    """Anchors as (H, W, 4*A) coordinate-major [cx|cy|w|h] for the kernel."""
    a = _grid_anchor_grid(H, W, stride_h, stride_w, cell)
    aw = a[..., 2] - a[..., 0]
    ah = a[..., 3] - a[..., 1]
    acx = a[..., 0] + 0.5 * aw
    acy = a[..., 1] + 0.5 * ah
    ctr = jnp.stack([acx, acy, aw, ah], axis=2)                        # (H,W,4,A)
    return ctr.reshape(H, W, 4 * a.shape[2])


def grid_anchors_am(H, W, stride_h, stride_w, cell):
    """Anchors in torchvision's (H*W, A, 4) anchor-major layout (reference)."""
    a = _grid_anchor_grid(H, W, stride_h, stride_w, cell)
    return a.reshape(H * W, -1, 4)


# ----------------------------------------------------------------------------
# Plain-JAX glue: per-level top-k, batched NMS with fixed-size padded outputs
# ----------------------------------------------------------------------------
def pairwise_iou(b1, b2):
    area1 = (b1[:, 2] - b1[:, 0]) * (b1[:, 3] - b1[:, 1])
    area2 = (b2[:, 2] - b2[:, 0]) * (b2[:, 3] - b2[:, 1])
    lt = jnp.maximum(b1[:, None, :2], b2[None, :, :2])
    rb = jnp.minimum(b1[:, None, 2:], b2[None, :, 2:])
    wh = jnp.maximum(rb - lt, 0.0)
    inter = wh[..., 0] * wh[..., 1]
    union = area1[:, None] + area2[None, :] - inter
    return inter / jnp.maximum(union, 1e-9)


def filter_proposals(boxes_cm, scores_all, levels, num_anchors_per_level,
                     pre_nms_top_n, post_nms_top_n, score_thresh, nms_thresh,
                     min_size):
    """boxes_cm (N,4,K), scores_all (N,K) sigmoid probs -> fixed-size outputs."""
    # Per-level top-k (sigmoid is monotonic, so == top-k on raw logits).
    idx_list = []
    offset = 0
    for n_l in num_anchors_per_level:
        sc = scores_all[:, offset:offset + n_l]
        k = min(pre_nms_top_n, n_l)
        _, top = jax.lax.top_k(sc, k)
        idx_list.append(top + offset)
        offset += n_l
    top_idx = jnp.concatenate(idx_list, axis=1)                       # (N, T)
    cand_boxes = jnp.take_along_axis(boxes_cm, top_idx[:, None, :], axis=2)
    cand_boxes = jnp.transpose(cand_boxes, (0, 2, 1))                 # (N, T, 4)
    cand_scores = jnp.take_along_axis(scores_all, top_idx, axis=1)
    cand_lvls = levels[top_idx]

    def per_image(boxes, scores, lvls):
        ws = boxes[:, 2] - boxes[:, 0]
        hs = boxes[:, 3] - boxes[:, 1]
        valid = (ws >= min_size) & (hs >= min_size) & (scores >= score_thresh)
        # batched_nms trick: offset boxes per level so cross-level IoU == 0.
        max_coord = jnp.max(boxes)
        offs = lvls.astype(jnp.float32) * (max_coord + 1.0)
        boxes_nms = boxes + offs[:, None]
        sort_key = jnp.where(valid, scores, -jnp.inf)
        order = jnp.argsort(-sort_key)
        b = boxes[order]
        bn = boxes_nms[order]
        s = scores[order]
        v = valid[order]
        iou = pairwise_iou(bn, bn)
        M = b.shape[0]
        idx = jnp.arange(M)

        def body(i, suppressed):
            # only valid, un-suppressed boxes may suppress others
            can_suppress = jnp.logical_not(suppressed[i]) & v[i]
            new = (iou[i] > nms_thresh) & (idx > i) & can_suppress
            return suppressed | new

        suppressed = jax.lax.fori_loop(0, M, body, jnp.zeros((M,), jnp.bool_))
        kept = jnp.logical_not(suppressed) & v
        sel = jnp.where(kept, s, -jnp.inf)
        _, top_i = jax.lax.top_k(sel, post_nms_top_n)
        out_valid = jnp.take(kept, top_i)
        out_boxes = jnp.where(out_valid[:, None], jnp.take(b, top_i, axis=0), 0.0)
        out_scores = jnp.where(out_valid, jnp.take(s, top_i), 0.0)
        return out_boxes, out_scores, out_valid

    return jax.vmap(per_image)(cand_boxes, cand_scores, cand_lvls)


# ----------------------------------------------------------------------------
# Full RPN forward (eval mode: losses = {})
# ----------------------------------------------------------------------------
def rpn_forward(features_nchw, params, sizes, aspect_ratios, img_size,
                pre_nms_top_n=200, post_nms_top_n=50, nms_thresh=0.7,
                score_thresh=0.0, min_size=1e-3, max_rows_per_tile=128):
    A = len(sizes) * len(aspect_ratios)
    cell = generate_cell_anchors(sizes, aspect_ratios)
    w_conv, b_conv, w_head, b_head = _prep_params(params, A)

    score_lv, box_lv, n_per_lv = [], [], []
    for x in features_nchw:
        N, _, H, W = x.shape
        stride_h = img_size[0] // H
        stride_w = img_size[1] // W
        anc_ctr = grid_anchors_ctr_cm(H, W, stride_h, stride_w, cell)
        sc, bx = rpn_head_decode_level(x, w_conv, b_conv, w_head, b_head,
                                       anc_ctr, A, img_size, max_rows_per_tile)
        score_lv.append(sc)
        box_lv.append(bx)
        n_per_lv.append(H * W * A)

    scores_all = jnp.concatenate(score_lv, axis=1)         # (N, K)
    boxes_cm = jnp.concatenate(box_lv, axis=2)             # (N, 4, K)
    levels = jnp.concatenate(
        [jnp.full((n,), i, jnp.int32) for i, n in enumerate(n_per_lv)])

    boxes, scores, valid = filter_proposals(
        boxes_cm, scores_all, levels, n_per_lv,
        pre_nms_top_n, post_nms_top_n, score_thresh, nms_thresh, min_size)
    # TODO(synk): training branch (assign_targets_to_anchors / fg-bg sampling /
    # compute_loss) is data-dependent sampling with dynamic shapes; eval only.
    losses = {}
    return boxes, scores, valid, losses


# ----------------------------------------------------------------------------
# Pure-JAX reference (one level) for numerical verification of the kernel
# ----------------------------------------------------------------------------
def _reference_level(x_nchw, params, cell, A, img_size):
    N, Cin, H, W = x_nchw.shape
    Cmid = params["w_conv"].shape[-1]
    x = jnp.transpose(x_nchw, (0, 2, 3, 1)).astype(jnp.bfloat16)
    w_hwio = params["w_conv"].reshape(3, 3, Cin, Cmid).astype(jnp.bfloat16)
    hidden = jax.lax.conv_general_dilated(
        x, w_hwio, window_strides=(1, 1), padding="SAME",
        dimension_numbers=("NHWC", "HWIO", "NHWC"),
        preferred_element_type=jnp.float32)
    hidden = jnp.maximum(hidden + params["b_conv"].reshape(1, 1, 1, Cmid), 0.0)
    hflat = hidden.reshape(N * H * W, Cmid).astype(jnp.bfloat16)
    cls = (jnp.dot(hflat, params["w_cls"].astype(jnp.bfloat16),
                   preferred_element_type=jnp.float32)
           + params["b_cls"].reshape(1, A)).reshape(N, H * W, A)
    deltas = (jnp.dot(hflat, params["w_box"].astype(jnp.bfloat16),
                      preferred_element_type=jnp.float32)
              + params["b_box"].reshape(1, 4 * A)).reshape(N, H * W, A, 4)
    anc = grid_anchors_am(H, W, img_size[0] // H, img_size[1] // W, cell)
    aw = anc[..., 2] - anc[..., 0]
    ah = anc[..., 3] - anc[..., 1]
    acx = anc[..., 0] + 0.5 * aw
    acy = anc[..., 1] + 0.5 * ah
    tx, ty = deltas[..., 0], deltas[..., 1]
    tw = jnp.minimum(deltas[..., 2], _BBOX_XFORM_CLIP)
    th = jnp.minimum(deltas[..., 3], _BBOX_XFORM_CLIP)
    pcx = tx * aw + acx
    pcy = ty * ah + acy
    pw = jnp.exp(tw) * aw
    ph = jnp.exp(th) * ah
    x1 = jnp.clip(pcx - 0.5 * pw, 0.0, float(img_size[1]))
    y1 = jnp.clip(pcy - 0.5 * ph, 0.0, float(img_size[0]))
    x2 = jnp.clip(pcx + 0.5 * pw, 0.0, float(img_size[1]))
    y2 = jnp.clip(pcy + 0.5 * ph, 0.0, float(img_size[0]))
    boxes = jnp.stack([x1, y1, x2, y2], axis=-1).reshape(N, H * W * A, 4)
    scores = jax.nn.sigmoid(cls).reshape(N, H * W * A)
    return scores, boxes


# ----------------------------------------------------------------------------
if __name__ == "__main__":
    key = jax.random.PRNGKey(0)
    N, Cin, Cmid = 2, 16, 16
    level_shapes = [(16, 16), (8, 8)]
    img_size = (64, 64)            # (height, width)
    sizes = (32.0,)
    aspect_ratios = (0.5, 1.0, 2.0)
    A = len(sizes) * len(aspect_ratios)

    keys = jax.random.split(key, 10)
    params = {
        # 3x3 conv weight stored as (9, Cin, Cmid) with k = dy*3 + dx
        # (torch layout (Cmid, Cin, 3, 3) transposed at import time).
        "w_conv": 0.1 * jax.random.normal(keys[0], (9, Cin, Cmid), jnp.float32),
        "b_conv": 0.1 * jax.random.normal(keys[1], (Cmid,), jnp.float32),
        "w_cls": 0.1 * jax.random.normal(keys[2], (Cmid, A), jnp.float32),
        "b_cls": 0.1 * jax.random.normal(keys[3], (A,), jnp.float32),
        # bbox weight columns in torch's anchor-major order (a*4 + c).
        "w_box": 0.1 * jax.random.normal(keys[4], (Cmid, 4 * A), jnp.float32),
        "b_box": 0.05 * jax.random.normal(keys[5], (4 * A,), jnp.float32),
    }
    features = [jax.random.normal(keys[6 + i], (N, Cin, H, W), jnp.float32)
                for i, (H, W) in enumerate(level_shapes)]

    # ---- numerical self-check of the fused head+decode kernel vs plain JAX ----
    cell = generate_cell_anchors(sizes, aspect_ratios)
    w_conv_p, b_conv_p, w_head_p, b_head_p = _prep_params(params, A)
    for x in features:
        _, _, H, W = x.shape
        anc_ctr = grid_anchors_ctr_cm(H, W, img_size[0] // H, img_size[1] // W,
                                      cell)
        sc_k, bx_k = rpn_head_decode_level(
            x, w_conv_p, b_conv_p, w_head_p, b_head_p, anc_ctr, A, img_size,
            max_rows_per_tile=8)   # forces nT > 1 on the 16x16 level (halo path)
        sc_r, bx_r = _reference_level(x, params, cell, A, img_size)
        bx_k_t = jnp.transpose(bx_k, (0, 2, 1))          # (N, K_l, 4)
        sd = float(jnp.max(jnp.abs(sc_k - sc_r)))
        bd = float(jnp.max(jnp.abs(bx_k_t - bx_r)))
        assert sd < 2e-2, f"score mismatch: max abs diff {sd}"
        assert bd < 1.0, f"box mismatch: max abs diff {bd}"

    # ---- full eval forward ----
    boxes, scores, valid, losses = rpn_forward(
        features, params, sizes, aspect_ratios, img_size,
        pre_nms_top_n=200, post_nms_top_n=50, nms_thresh=0.7,
        score_thresh=0.0, min_size=1e-3, max_rows_per_tile=8)

    jax.block_until_ready((boxes, scores, valid))
    assert boxes.shape == (N, 50, 4) and scores.shape == (N, 50)
    assert valid.shape == (N, 50) and losses == {}
    print("KERNEL_OK")
</pallas_src>

<mosaic_0001>
module attributes {stable_mosaic.version = 11 : i64} {
  func.func @_head_decode_kernel(%arg0: i32, %arg1: i32, %arg2: memref<1x8x18x16xbf16, #tpu.memory_space<vmem>>, %arg3: memref<1x1x18x16xbf16, #tpu.memory_space<vmem>>, %arg4: memref<1x1x18x16xbf16, #tpu.memory_space<vmem>>, %arg5: memref<9x16x16xbf16, #tpu.memory_space<vmem>>, %arg6: memref<1x16xf32, #tpu.memory_space<vmem>>, %arg7: memref<16x15xbf16, #tpu.memory_space<vmem>>, %arg8: memref<1x15xf32, #tpu.memory_space<vmem>>, %arg9: memref<8x16x12xf32, #tpu.memory_space<vmem>>, %arg10: memref<1x128x3xf32, #tpu.memory_space<vmem>>, %arg11: memref<1x4x128x3xf32, #tpu.memory_space<vmem>>, %arg12: memref<10x18x16xbf16, #tpu.memory_space<vmem>>) attributes {dimension_semantics = [#tpu.dimension_semantics<parallel>, #tpu.dimension_semantics<parallel>], iteration_bounds = array<i64: 2, 2>, scalar_prefetch = 0 : i64, scratch_operands = 1 : i64, tpu.core_type = #tpu.core_type<tc>, window_params = [{transform_indices = @transform_0, window_bounds = array<i64: 1, 8, 18, 16>}, {transform_indices = @transform_1, window_bounds = array<i64: 1, 1, 18, 16>}, {transform_indices = @transform_2, window_bounds = array<i64: 1, 1, 18, 16>}, {pipeline_mode = #tpu.pipeline_mode<synchronous>, transform_indices = @transform_3, window_bounds = array<i64: 9, 16, 16>}, {pipeline_mode = #tpu.pipeline_mode<synchronous>, transform_indices = @transform_4, window_bounds = array<i64: 1, 16>}, {pipeline_mode = #tpu.pipeline_mode<synchronous>, transform_indices = @transform_5, window_bounds = array<i64: 16, 15>}, {pipeline_mode = #tpu.pipeline_mode<synchronous>, transform_indices = @transform_6, window_bounds = array<i64: 1, 15>}, {transform_indices = @transform_7, window_bounds = array<i64: 8, 16, 12>}, {transform_indices = @transform_8, window_bounds = array<i64: 1, 128, 3>}, {transform_indices = @transform_9, window_bounds = array<i64: 1, 4, 128, 3>}]} {
    %c0 = arith.constant 0 : index
    %c0_0 = arith.constant 0 : index
    %c0_1 = arith.constant 0 : index
    %c0_2 = arith.constant 0 : index
    %0 = vector.load %arg3[%c0, %c0_0, %c0_1, %c0_2] : memref<1x1x18x16xbf16, #tpu.memory_space<vmem>>, vector<1x1x18x16xbf16>
    %1 = vector.shape_cast %0 : vector<1x1x18x16xbf16> to vector<1x18x16xbf16>
    %c0_3 = arith.constant 0 : index
    %c0_4 = arith.constant 0 : index
    %c0_5 = arith.constant 0 : index
    %2 = vector.load %arg12[%c0_3, %c0_4, %c0_5] : memref<10x18x16xbf16, #tpu.memory_space<vmem>>, vector<1x18x16xbf16>
    tpu.vector_store %arg12[%c0_3, %c0_4, %c0_5], %1 {strides = array<i32>} : memref<10x18x16xbf16, #tpu.memory_space<vmem>>, vector<1x18x16xbf16>,
    %c0_6 = arith.constant 0 : index
    %c0_7 = arith.constant 0 : index
    %c0_8 = arith.constant 0 : index
    %c0_9 = arith.constant 0 : index
    %3 = vector.load %arg2[%c0_6, %c0_7, %c0_8, %c0_9] : memref<1x8x18x16xbf16, #tpu.memory_space<vmem>>, vector<1x8x18x16xbf16>
    %4 = vector.shape_cast %3 : vector<1x8x18x16xbf16> to vector<8x18x16xbf16>
    %c1 = arith.constant 1 : index
    %c0_10 = arith.constant 0 : index
    %c0_11 = arith.constant 0 : index
    %5 = vector.load %arg12[%c1, %c0_10, %c0_11] : memref<10x18x16xbf16, #tpu.memory_space<vmem>>, vector<8x18x16xbf16>
    tpu.vector_store %arg12[%c1, %c0_10, %c0_11], %4 {strides = array<i32>} : memref<10x18x16xbf16, #tpu.memory_space<vmem>>, vector<8x18x16xbf16>,
    %c0_12 = arith.constant 0 : index
    %c0_13 = arith.constant 0 : index
    %c0_14 = arith.constant 0 : index
    %c0_15 = arith.constant 0 : index
    %6 = vector.load %arg4[%c0_12, %c0_13, %c0_14, %c0_15] : memref<1x1x18x16xbf16, #tpu.memory_space<vmem>>, vector<1x1x18x16xbf16>
    %7 = vector.shape_cast %6 : vector<1x1x18x16xbf16> to vector<1x18x16xbf16>
    %c9 = arith.constant 9 : index
    %c0_16 = arith.constant 0 : index
    %c0_17 = arith.constant 0 : index
    %8 = vector.load %arg12[%c9, %c0_16, %c0_17] : memref<10x18x16xbf16, #tpu.memory_space<vmem>>, vector<1x18x16xbf16>
    tpu.vector_store %arg12[%c9, %c0_16, %c0_17], %7 {strides = array<i32>} : memref<10x18x16xbf16, #tpu.memory_space<vmem>>, vector<1x18x16xbf16>,
    %c0_18 = arith.constant 0 : index
    %c0_19 = arith.constant 0 : index
    %c0_20 = arith.constant 0 : index
    %9 = vector.load %arg12[%c0_18, %c0_19, %c0_20] : memref<10x18x16xbf16, #tpu.memory_space<vmem>>, vector<10x18x16xbf16>
    %cst = arith.constant 0.000000e+00 : f32
    %10 = vector.broadcast %cst : f32 to vector<128x16xf32>
    %11 = vector.extract_strided_slice %9 {offsets = [0, 0, 0], sizes = [8, 16, 16], strides = [1, 1, 1]} : vector<10x18x16xbf16> to vector<8x16x16xbf16>
    %12 = vector.shape_cast %11 : vector<8x16x16xbf16> to vector<128x16xbf16>
    %c0_21 = arith.constant 0 : index
    %c0_22 = arith.constant 0 : index
    %c0_23 = arith.constant 0 : index
    %13 = vector.load %arg5[%c0_21, %c0_22, %c0_23] : memref<9x16x16xbf16, #tpu.memory_space<vmem>>, vector<1x16x16xbf16>
    %14 = vector.shape_cast %13 : vector<1x16x16xbf16> to vector<16x16xbf16>
    %cst_24 = arith.constant dense<0.000000e+00> : vector<128x16xf32>
    %15 = tpu.matmul %12, %14, %cst_24 {dimension_numbers = #tpu.dot_dimension_numbers<[1], [0], [0], [1], [0, 0, 1, 1], [], []>} : vector<128x16xbf16>, vector<16x16xbf16>, vector<128x16xf32> -> vector<128x16xf32>
    %16 = arith.addf %10, %15 : vector<128x16xf32>
    %17 = vector.extract_strided_slice %9 {offsets = [0, 1, 0], sizes = [8, 16, 16], strides = [1, 1, 1]} : vector<10x18x16xbf16> to vector<8x16x16xbf16>
    %18 = vector.shape_cast %17 : vector<8x16x16xbf16> to vector<128x16xbf16>
    %c1_25 = arith.constant 1 : index
    %c0_26 = arith.constant 0 : index
    %c0_27 = arith.constant 0 : index
    %19 = vector.load %arg5[%c1_25, %c0_26, %c0_27] : memref<9x16x16xbf16, #tpu.memory_space<vmem>>, vector<1x16x16xbf16>
    %20 = vector.shape_cast %19 : vector<1x16x16xbf16> to vector<16x16xbf16>
    %cst_28 = arith.constant dense<0.000000e+00> : vector<128x16xf32>
    %21 = tpu.matmul %18, %20, %cst_28 {dimension_numbers = #tpu.dot_dimension_numbers<[1], [0], [0], [1], [0, 0, 1, 1], [], []>} : vector<128x16xbf16>, vector<16x16xbf16>, vector<128x16xf32> -> vector<128x16xf32>
    %22 = arith.addf %16, %21 : vector<128x16xf32>
    %23 = vector.extract_strided_slice %9 {offsets = [0, 2, 0], sizes = [8, 16, 16], strides = [1, 1, 1]} : vector<10x18x16xbf16> to vector<8x16x16xbf16>
    %24 = vector.shape_cast %23 : vector<8x16x16xbf16> to vector<128x16xbf16>
    %c2 = arith.constant 2 : index
    %c0_29 = arith.constant 0 : index
    %c0_30 = arith.constant 0 : index
    %25 = vector.load %arg5[%c2, %c0_29, %c0_30] : memref<9x16x16xbf16, #tpu.memory_space<vmem>>, vector<1x16x16xbf16>
    %26 = vector.shape_cast %25 : vector<1x16x16xbf16> to vector<16x16xbf16>
    %cst_31 = arith.constant dense<0.000000e+00> : vector<128x16xf32>
    %27 = tpu.matmul %24, %26, %cst_31 {dimension_numbers = #tpu.dot_dimension_numbers<[1], [0], [0], [1], [0, 0, 1, 1], [], []>} : vector<128x16xbf16>, vector<16x16xbf16>, vector<128x16xf32> -> vector<128x16xf32>
    %28 = arith.addf %22, %27 : vector<128x16xf32>
    %29 = vector.extract_strided_slice %9 {offsets = [1, 0, 0], sizes = [8, 16, 16], strides = [1, 1, 1]} : vector<10x18x16xbf16> to vector<8x16x16xbf16>
    %30 = vector.shape_cast %29 : vector<8x16x16xbf16> to vector<128x16xbf16>
    %c3 = arith.constant 3 : index
    %c0_32 = arith.constant 0 : index
    %c0_33 = arith.constant 0 : index
    %31 = vector.load %arg5[%c3, %c0_32, %c0_33] : memref<9x16x16xbf16, #tpu.memory_space<vmem>>, vector<1x16x16xbf16>
    %32 = vector.shape_cast %31 : vector<1x16x16xbf16> to vector<16x16xbf16>
    %cst_34 = arith.constant dense<0.000000e+00> : vector<128x16xf32>
    %33 = tpu.matmul %30, %32, %cst_34 {dimension_numbers = #tpu.dot_dimension_numbers<[1], [0], [0], [1], [0, 0, 1, 1], [], []>} : vector<128x16xbf16>, vector<16x16xbf16>, vector<128x16xf32> -> vector<128x16xf32>
    %34 = arith.addf %28, %33 : vector<128x16xf32>
    %35 = vector.extract_strided_slice %9 {offsets = [1, 1, 0], sizes = [8, 16, 16], strides = [1, 1, 1]} : vector<10x18x16xbf16> to vector<8x16x16xbf16>
    %36 = vector.shape_cast %35 : vector<8x16x16xbf16> to vector<128x16xbf16>
    %c4 = arith.constant 4 : index
    %c0_35 = arith.constant 0 : index
    %c0_36 = arith.constant 0 : index
    %37 = vector.load %arg5[%c4, %c0_35, %c0_36] : memref<9x16x16xbf16, #tpu.memory_space<vmem>>, vector<1x16x16xbf16>
    %38 = vector.shape_cast %37 : vector<1x16x16xbf16> to vector<16x16xbf16>
    %cst_37 = arith.constant dense<0.000000e+00> : vector<128x16xf32>
    %39 = tpu.matmul %36, %38, %cst_37 {dimension_numbers = #tpu.dot_dimension_numbers<[1], [0], [0], [1], [0, 0, 1, 1], [], []>} : vector<128x16xbf16>, vector<16x16xbf16>, vector<128x16xf32> -> vector<128x16xf32>
    %40 = arith.addf %34, %39 : vector<128x16xf32>
    %41 = vector.extract_strided_slice %9 {offsets = [1, 2, 0], sizes = [8, 16, 16], strides = [1, 1, 1]} : vector<10x18x16xbf16> to vector<8x16x16xbf16>
    %42 = vector.shape_cast %41 : vector<8x16x16xbf16> to vector<128x16xbf16>
    %c5 = arith.constant 5 : index
    %c0_38 = arith.constant 0 : index
    %c0_39 = arith.constant 0 : index
    %43 = vector.load %arg5[%c5, %c0_38, %c0_39] : memref<9x16x16xbf16, #tpu.memory_space<vmem>>, vector<1x16x16xbf16>
    %44 = vector.shape_cast %43 : vector<1x16x16xbf16> to vector<16x16xbf16>
    %cst_40 = arith.constant dense<0.000000e+00> : vector<128x16xf32>
    %45 = tpu.matmul %42, %44, %cst_40 {dimension_numbers = #tpu.dot_dimension_numbers<[1], [0], [0], [1], [0, 0, 1, 1], [], []>} : vector<128x16xbf16>, vector<16x16xbf16>, vector<128x16xf32> -> vector<128x16xf32>
    %46 = arith.addf %40, %45 : vector<128x16xf32>
    %47 = vector.extract_strided_slice %9 {offsets = [2, 0, 0], sizes = [8, 16, 16], strides = [1, 1, 1]} : vector<10x18x16xbf16> to vector<8x16x16xbf16>
    %48 = vector.shape_cast %47 : vector<8x16x16xbf16> to vector<128x16xbf16>
    %c6 = arith.constant 6 : index
    %c0_41 = arith.constant 0 : index
    %c0_42 = arith.constant 0 : index
    %49 = vector.load %arg5[%c6, %c0_41, %c0_42] : memref<9x16x16xbf16, #tpu.memory_space<vmem>>, vector<1x16x16xbf16>
    %50 = vector.shape_cast %49 : vector<1x16x16xbf16> to vector<16x16xbf16>
    %cst_43 = arith.constant dense<0.000000e+00> : vector<128x16xf32>
    %51 = tpu.matmul %48, %50, %cst_43 {dimension_numbers = #tpu.dot_dimension_numbers<[1], [0], [0], [1], [0, 0, 1, 1], [], []>} : vector<128x16xbf16>, vector<16x16xbf16>, vector<128x16xf32> -> vector<128x16xf32>
    %52 = arith.addf %46, %51 : vector<128x16xf32>
    %53 = vector.extract_strided_slice %9 {offsets = [2, 1, 0], sizes = [8, 16, 16], strides = [1, 1, 1]} : vector<10x18x16xbf16> to vector<8x16x16xbf16>
    %54 = vector.shape_cast %53 : vector<8x16x16xbf16> to vector<128x16xbf16>
    %c7 = arith.constant 7 : index
    %c0_44 = arith.constant 0 : index
    %c0_45 = arith.constant 0 : index
    %55 = vector.load %arg5[%c7, %c0_44, %c0_45] : memref<9x16x16xbf16, #tpu.memory_space<vmem>>, vector<1x16x16xbf16>
    %56 = vector.shape_cast %55 : vector<1x16x16xbf16> to vector<16x16xbf16>
    %cst_46 = arith.constant dense<0.000000e+00> : vector<128x16xf32>
    %57 = tpu.matmul %54, %56, %cst_46 {dimension_numbers = #tpu.dot_dimension_numbers<[1], [0], [0], [1], [0, 0, 1, 1], [], []>} : vector<128x16xbf16>, vector<16x16xbf16>, vector<128x16xf32> -> vector<128x16xf32>
    %58 = arith.addf %52, %57 : vector<128x16xf32>
    %59 = vector.extract_strided_slice %9 {offsets = [2, 2, 0], sizes = [8, 16, 16], strides = [1, 1, 1]} : vector<10x18x16xbf16> to vector<8x16x16xbf16>
    %60 = vector.shape_cast %59 : vector<8x16x16xbf16> to vector<128x16xbf16>
    %c8 = arith.constant 8 : index
    %c0_47 = arith.constant 0 : index
    %c0_48 = arith.constant 0 : index
    %61 = vector.load %arg5[%c8, %c0_47, %c0_48] : memref<9x16x16xbf16, #tpu.memory_space<vmem>>, vector<1x16x16xbf16>
    %62 = vector.shape_cast %61 : vector<1x16x16xbf16> to vector<16x16xbf16>
    %cst_49 = arith.constant dense<0.000000e+00> : vector<128x16xf32>
    %63 = tpu.matmul %60, %62, %cst_49 {dimension_numbers = #tpu.dot_dimension_numbers<[1], [0], [0], [1], [0, 0, 1, 1], [], []>} : vector<128x16xbf16>, vector<16x16xbf16>, vector<128x16xf32> -> vector<128x16xf32>
    %64 = arith.addf %58, %63 : vector<128x16xf32>
    %c0_50 = arith.constant 0 : index
    %c0_51 = arith.constant 0 : index
    %65 = vector.load %arg6[%c0_50, %c0_51] : memref<1x16xf32, #tpu.memory_space<vmem>>, vector<1x16xf32>
    %66 = vector.broadcast %65 : vector<1x16xf32> to vector<128x16xf32>
    %67 = arith.addf %64, %66 : vector<128x16xf32>
    %cst_52 = arith.constant 0.000000e+00 : f32
    %68 = vector.broadcast %cst_52 : f32 to vector<128x16xf32>
    %69 = arith.maximumf %67, %68 : vector<128x16xf32>
    %70 = arith.truncf %69 : vector<128x16xf32> to vector<128x16xbf16>
    %c0_53 = arith.constant 0 : index
    %c0_54 = arith.constant 0 : index
    %71 = vector.load %arg7[%c0_53, %c0_54] : memref<16x15xbf16, #tpu.memory_space<vmem>>, vector<16x15xbf16>
    %cst_55 = arith.constant dense<0.000000e+00> : vector<128x15xf32>
    %72 = tpu.matmul %70, %71, %cst_55 {dimension_numbers = #tpu.dot_dimension_numbers<[1], [0], [0], [1], [0, 0, 1, 1], [], []>} : vector<128x16xbf16>, vector<16x15xbf16>, vector<128x15xf32> -> vector<128x15xf32>
    %c0_56 = arith.constant 0 : index
    %c0_57 = arith.constant 0 : index
    %73 = vector.load %arg8[%c0_56, %c0_57] : memref<1x15xf32, #tpu.memory_space<vmem>>, vector<1x15xf32>
    %74 = vector.broadcast %73 : vector<1x15xf32> to vector<128x15xf32>
    %75 = arith.addf %72, %74 : vector<128x15xf32>
    %76 = vector.extract_strided_slice %75 {offsets = [0, 0], sizes = [128, 3], strides = [1, 1]} : vector<128x15xf32> to vector<128x3xf32>
    %77 = vector.extract_strided_slice %75 {offsets = [0, 3], sizes = [128, 6], strides = [1, 1]} : vector<128x15xf32> to vector<128x6xf32>
    %78 = vector.extract_strided_slice %75 {offsets = [0, 9], sizes = [128, 6], strides = [1, 1]} : vector<128x15xf32> to vector<128x6xf32>
    %cst_58 = arith.constant 4.13516665 : f32
    %79 = vector.broadcast %cst_58 : f32 to vector<128x6xf32>
    %80 = arith.minimumf %78, %79 : vector<128x6xf32>
    %c0_59 = arith.constant 0 : index
    %c0_60 = arith.constant 0 : index
    %c0_61 = arith.constant 0 : index
    %81 = vector.load %arg9[%c0_59, %c0_60, %c0_61] : memref<8x16x12xf32, #tpu.memory_space<vmem>>, vector<8x16x12xf32>
    %82 = vector.shape_cast %81 : vector<8x16x12xf32> to vector<128x12xf32>
    %83 = vector.extract_strided_slice %82 {offsets = [0, 0], sizes = [128, 6], strides = [1, 1]} : vector<128x12xf32> to vector<128x6xf32>
    %84 = vector.extract_strided_slice %82 {offsets = [0, 6], sizes = [128, 6], strides = [1, 1]} : vector<128x12xf32> to vector<128x6xf32>
    %85 = arith.mulf %77, %84 : vector<128x6xf32>
    %86 = arith.addf %85, %83 : vector<128x6xf32>
    %87 = math.exp %80 : vector<128x6xf32>
    %88 = arith.mulf %87, %84 : vector<128x6xf32>
    %cst_62 = arith.constant 5.000000e-01 : f32
    %89 = vector.broadcast %cst_62 : f32 to vector<128x6xf32>
    %90 = arith.mulf %89, %88 : vector<128x6xf32>
    %91 = tpu.iota {dimensions = array<i32: 1>} : vector<1x6xi32>
    %c3_i32 = arith.constant 3 : i32
    %92 = vector.broadcast %c3_i32 : i32 to vector<1x6xi32>
    %93 = arith.cmpi slt, %91, %92 : vector<1x6xi32>
    %cst_63 = arith.constant 6.400000e+01 : f32
    %cst_64 = arith.constant 6.400000e+01 : f32
    %94 = vector.broadcast %cst_63 : f32 to vector<1x6xf32>
    %95 = vector.broadcast %cst_64 : f32 to vector<1x6xf32>
    %96 = arith.select %93, %94, %95 : vector<1x6xi1>, vector<1x6xf32>
    %97 = arith.subf %86, %90 : vector<128x6xf32>
    %cst_65 = arith.constant 0.000000e+00 : f32
    %98 = vector.broadcast %cst_65 : f32 to vector<128x6xf32>
    %99 = arith.maximumf %97, %98 : vector<128x6xf32>
    %100 = vector.broadcast %96 : vector<1x6xf32> to vector<128x6xf32>
    %101 = arith.minimumf %99, %100 : vector<128x6xf32>
    %102 = arith.addf %86, %90 : vector<128x6xf32>
    %cst_66 = arith.constant 0.000000e+00 : f32
    %103 = vector.broadcast %cst_66 : f32 to vector<128x6xf32>
    %104 = arith.maximumf %102, %103 : vector<128x6xf32>
    %105 = vector.broadcast %96 : vector<1x6xf32> to vector<128x6xf32>
    %106 = arith.minimumf %104, %105 : vector<128x6xf32>
    %cst_67 = arith.constant 0.000000e+00 : f32
    %107 = vector.broadcast %cst_67 : f32 to vector<128x3xf32>
    %108 = arith.subf %107, %76 : vector<128x3xf32>
    %109 = math.exp %108 : vector<128x3xf32>
    %cst_68 = arith.constant 1.000000e+00 : f32
    %110 = vector.broadcast %cst_68 : f32 to vector<128x3xf32>
    %111 = arith.addf %110, %109 : vector<128x3xf32>
    %112 = tpu.reciprocal %111 {approx = true} : vector<128x3xf32> -> vector<128x3xf32>
    %c0_69 = arith.constant 0 : index
    %c0_70 = arith.constant 0 : index
    %c0_71 = arith.constant 0 : index
    %113 = vector.load %arg10[%c0_69, %c0_70, %c0_71] : memref<1x128x3xf32, #tpu.memory_space<vmem>>, vector<1x128x3xf32>
    %114 = vector.shape_cast %113 : vector<1x128x3xf32> to vector<128x3xf32>
    %115 = vector.shape_cast %112 : vector<128x3xf32> to vector<1x128x3xf32>
    tpu.vector_store %arg10[%c0_69, %c0_70, %c0_71], %115 {strides = array<i32>} : memref<1x128x3xf32, #tpu.memory_space<vmem>>, vector<1x128x3xf32>,
    %116 = vector.extract_strided_slice %101 {offsets = [0, 0], sizes = [128, 3], strides = [1, 1]} : vector<128x6xf32> to vector<128x3xf32>
    %c0_72 = arith.constant 0 : index
    %c0_73 = arith.constant 0 : index
    %c0_74 = arith.constant 0 : index
    %c0_75 = arith.constant 0 : index
    %117 = vector.load %arg11[%c0_72, %c0_73, %c0_74, %c0_75] : memref<1x4x128x3xf32, #tpu.memory_space<vmem>>, vector<1x1x128x3xf32>
    %118 = vector.shape_cast %117 : vector<1x1x128x3xf32> to vector<128x3xf32>
    %119 = vector.shape_cast %116 : vector<128x3xf32> to vector<1x1x128x3xf32>
    tpu.vector_store %arg11[%c0_72, %c0_73, %c0_74, %c0_75], %119 {strides = array<i32>} : memref<1x4x128x3xf32, #tpu.memory_space<vmem>>, vector<1x1x128x3xf32>,
    %120 = vector.extract_strided_slice %101 {offsets = [0, 3], sizes = [128, 3], strides = [1, 1]} : vector<128x6xf32> to vector<128x3xf32>
    %c0_76 = arith.constant 0 : index
    %c1_77 = arith.constant 1 : index
    %c0_78 = arith.constant 0 : index
    %c0_79 = arith.constant 0 : index
    %121 = vector.load %arg11[%c0_76, %c1_77, %c0_78, %c0_79] : memref<1x4x128x3xf32, #tpu.memory_space<vmem>>, vector<1x1x128x3xf32>
    %122 = vector.shape_cast %121 : vector<1x1x128x3xf32> to vector<128x3xf32>
    %123 = vector.shape_cast %120 : vector<128x3xf32> to vector<1x1x128x3xf32>
    tpu.vector_store %arg11[%c0_76, %c1_77, %c0_78, %c0_79], %123 {strides = array<i32>} : memref<1x4x128x3xf32, #tpu.memory_space<vmem>>, vector<1x1x128x3xf32>,
    %124 = vector.extract_strided_slice %106 {offsets = [0, 0], sizes = [128, 3], strides = [1, 1]} : vector<128x6xf32> to vector<128x3xf32>
    %c0_80 = arith.constant 0 : index
    %c2_81 = arith.constant 2 : index
    %c0_82 = arith.constant 0 : index
    %c0_83 = arith.constant 0 : index
    %125 = vector.load %arg11[%c0_80, %c2_81, %c0_82, %c0_83] : memref<1x4x128x3xf32, #tpu.memory_space<vmem>>, vector<1x1x128x3xf32>
    %126 = vector.shape_cast %125 : vector<1x1x128x3xf32> to vector<128x3xf32>
    %127 = vector.shape_cast %124 : vector<128x3xf32> to vector<1x1x128x3xf32>
    tpu.vector_store %arg11[%c0_80, %c2_81, %c0_82, %c0_83], %127 {strides = array<i32>} : memref<1x4x128x3xf32, #tpu.memory_space<vmem>>, vector<1x1x128x3xf32>,
    %128 = vector.extract_strided_slice %106 {offsets = [0, 3], sizes = [128, 3], strides = [1, 1]} : vector<128x6xf32> to vector<128x3xf32>
    %c0_84 = arith.constant 0 : index
    %c3_85 = arith.constant 3 : index
    %c0_86 = arith.constant 0 : index
    %c0_87 = arith.constant 0 : index
    %129 = vector.load %arg11[%c0_84, %c3_85, %c0_86, %c0_87] : memref<1x4x128x3xf32, #tpu.memory_space<vmem>>, vector<1x1x128x3xf32>
    %130 = vector.shape_cast %129 : vector<1x1x128x3xf32> to vector<128x3xf32>
    %131 = vector.shape_cast %128 : vector<128x3xf32> to vector<1x1x128x3xf32>
    tpu.vector_store %arg11[%c0_84, %c3_85, %c0_86, %c0_87], %131 {strides = array<i32>} : memref<1x4x128x3xf32, #tpu.memory_space<vmem>>, vector<1x1x128x3xf32>,
    return
  }
  func.func @transform_0(%arg0: i32, %arg1: i32) -> (i32, i32, i32, i32) {
    %c0_i32 = arith.constant 0 : i32
    %c0_i32_0 = arith.constant 0 : i32
    %c0_i32_1 = arith.constant 0 : i32
    return %arg0, %arg1, %c0_i32, %c0_i32_0 : i32, i32, i32, i32
  }
  func.func @transform_1(%arg0: i32, %arg1: i32) -> (i32, i32, i32, i32) {
    %c0_i32 = arith.constant 0 : i32
    %c0_i32_0 = arith.constant 0 : i32
    %c0_i32_1 = arith.constant 0 : i32
    return %arg0, %arg1, %c0_i32, %c0_i32_0 : i32, i32, i32, i32
  }
  func.func @transform_2(%arg0: i32, %arg1: i32) -> (i32, i32, i32, i32) {
    %c0_i32 = arith.constant 0 : i32
    %c0_i32_0 = arith.constant 0 : i32
    %c0_i32_1 = arith.constant 0 : i32
    return %arg0, %arg1, %c0_i32, %c0_i32_0 : i32, i32, i32, i32
  }
  func.func @transform_3(%arg0: i32, %arg1: i32) -> (i32, i32, i32) {
    %c0_i32 = arith.constant 0 : i32
    %c0_i32_0 = arith.constant 0 : i32
    %c0_i32_1 = arith.constant 0 : i32
    %c0_i32_2 = arith.constant 0 : i32
    return %c0_i32, %c0_i32_0, %c0_i32_1 : i32, i32, i32
  }
  func.func @transform_4(%arg0: i32, %arg1: i32) -> (i32, i32) {
    %c0_i32 = arith.constant 0 : i32
    %c0_i32_0 = arith.constant 0 : i32
    %c0_i32_1 = arith.constant 0 : i32
    return %c0_i32, %c0_i32_0 : i32, i32
  }
  func.func @transform_5(%arg0: i32, %arg1: i32) -> (i32, i32) {
    %c0_i32 = arith.constant 0 : i32
    %c0_i32_0 = arith.constant 0 : i32
    %c0_i32_1 = arith.constant 0 : i32
    return %c0_i32, %c0_i32_0 : i32, i32
  }
  func.func @transform_6(%arg0: i32, %arg1: i32) -> (i32, i32) {
    %c0_i32 = arith.constant 0 : i32
    %c0_i32_0 = arith.constant 0 : i32
    %c0_i32_1 = arith.constant 0 : i32
    return %c0_i32, %c0_i32_0 : i32, i32
  }
  func.func @transform_7(%arg0: i32, %arg1: i32) -> (i32, i32, i32) {
    %c0_i32 = arith.constant 0 : i32
    %c0_i32_0 = arith.constant 0 : i32
    %c0_i32_1 = arith.constant 0 : i32
    return %arg1, %c0_i32, %c0_i32_0 : i32, i32, i32
  }
  func.func @transform_8(%arg0: i32, %arg1: i32) -> (i32, i32, i32) {
    %c0_i32 = arith.constant 0 : i32
    %c0_i32_0 = arith.constant 0 : i32
    return %arg0, %arg1, %c0_i32 : i32, i32, i32
  }
  func.func @transform_9(%arg0: i32, %arg1: i32) -> (i32, i32, i32, i32) {
    %c0_i32 = arith.constant 0 : i32
    %c0_i32_0 = arith.constant 0 : i32
    %c0_i32_1 = arith.constant 0 : i32
    return %arg0, %c0_i32, %arg1, %c0_i32_0 : i32, i32, i32, i32
  }
}

</mosaic_0001>

<bundles_post_ra>
// kernel: tpu_custom_call.1
= control target key start
LH: loop header
LB: loop body
LE: loop exit
PB: predicated region body
PF: predicated region fallthrough
CT: control target
= control target key end

     0   :  { %s4507_s30 = smov 0   ;;  %s4509_s10 = smov 0   ;;  %s5845_s0 = inlined_call_operand.vmem [shape: bf16[2,16,18,16], index: 0, kind: input, shape index: {}]   ;;  %s5846_s1 = inlined_call_operand.vmem [shape: bf16[2,2,18,16], index: 1, kind: input, shape index: {}]   ;;  %s5847_s2 = inlined_call_operand.vmem [shape: bf16[2,2,18,16], index: 2, kind: input, shape index: {}]   ;;  %s5848_s3 = inlined_call_operand.vmem [shape: bf16[9,16,16], index: 3, kind: input, shape index: {}]   ;;  %s5849_s4 = inlined_call_operand.vmem [shape: f32[1,16], index: 4, kind: input, shape index: {}]   ;;  %s5850_s5 = inlined_call_operand.vmem [shape: bf16[16,15], index: 5, kind: input, shape index: {}]   ;;  %s5851_s6 = inlined_call_operand.vmem [shape: f32[1,15], index: 6, kind: input, shape index: {}]   ;;  %s5852_s7 = inlined_call_operand.vmem [shape: f32[16,16,12], index: 7, kind: input, shape index: {}]   ;;  %s5853_s8 = inlined_call_operand.vmem [shape: f32[2,256,3], index: 8, kind: output, shape index: {0}]   ;;  %s5854_s9 = inlined_call_operand.vmem [shape: f32[2,4,256,3], index: 9, kind: output, shape index: {1}]  }
   0x1   :  { %s4511_s11 = smov 0   ;;  %s4513_s12 = smov 0  }
   0x2   :  { %s4515_s13 = smov 0   ;;  %s4517_s14 = smov 0  }
   0x3   :  { %s4519_s15 = smov 0  }
   0x4 LB: > { %5860 = sst [smem:[#allocation4_spill]] %s4444_s13  ;;  %s29_s16 = sadd.s32 1, %s4444_s13  ;;  %s4452_s15 = sphi %s4519_s15, %s20_s15   ;;  %s4448_s14 = sphi %s4517_s14, %s5878_s14   ;;  %s4444_s13 = sphi %s4515_s13, %s5877_s13   ;;  %s4440_s12 = sphi %s4513_s12, %s5876_s12   ;;  %s4436_s11 = sphi %s4511_s11, %s5875_s11   ;;  %s4432_s10 = sphi %s4509_s10, %s5880_s10   ;;  %s4428_s30 = sphi %s4507_s30, %s5879_s30  }
   0x5   : > { %5861 = sst [smem:[#allocation5_spill]] %s4448_s14  ;;  %p30_p0 = scmp.ge.s32.totalorder %s29_s16, 2 }
   0x6   : > { %s32_s17 = sadd.s32 1, %s4448_s14  ;;  %s3610_s18 = sadd.s32 4294967295, %s4452_s15  }
   0x7   : > { %p273_p1 = scmp.ne.s32.totalorder %s4432_s10, %s4428_s30  ;;  %s5882_s16 = smov (%p30_p0, %s29_s16), 0 }
   0x8   : > { %5862 = sst [smem:[#allocation6_spill]] %s5882_s16  ;;  %s5884_s17 = smov (!%p30_p0, %s32_s17), %s4448_s14 }
   0x9   : > { %s259_s19 = ssub.s32 %s4444_s13, %s5882_s16  ;;  %p274_p2 = scmp.eq.s32.totalorder %s3610_s18, 3 }
   0xa   : > { %p34_p3 = scmp.ge.s32.totalorder %s5884_s17, 2  ;;  %p3614_p4 = scmp.ge.s32.totalorder %s4452_s15, 1 }
   0xb   : > { %p4553_p5 = por %p274_p2, %p273_p1  ;;  %p358_p6 = scmp.lt.s32.totalorder %s4452_s15, 5 }
   0xc   : > { %s5886_s17 = smov (%p34_p3, %s5884_s17), 0  ;;  %s263_s23 = sadd.s32 1, %s4432_s10 }
   0xd   : > { %5864 = sst [smem:[#allocation7_spill]] %s5886_s17  ;;  %p359_p7 = pnand %p3614_p4, %p358_p6 }
   0xe   : > { %s258_s21 = ssub.s32 %s4448_s14, %s5886_s17 }
   0xf   : > { %s260_s22 = sor.u32 %s259_s19, %s258_s21  ;;  %362 = sbr.rel (%p359_p7) target bundleno = 1028 (0x404), region = 52 }
  0x10   : > { %p261_p8 = scmp.eq.s32.totalorder %s260_s22, 0 }
  0x12   : > { %s4564_s24 = scalar_select %p261_p8, %s4432_s10, %s263_s23  }
  0x16   : > { %v4290_v0 = vld [vmem:[%s5848_s3 + $0x8] sm:$0xff]   ;;  %s3616_s27 = sshll.u32 %s4436_s11, 3  ;;  %v4291_v1 = vld [vmem:[%s5848_s3 + $0x20] sm:$0xff]   ;;  %p432_p9 = scmp.lt.s32.totalorder %s4440_s12, 1  ;;  %vm482_vm0 = vcmask 125952   ;;  %vm485_vm1 = vcmask 122880  }
  0x17   : > { %3919 = vmatprep.subr.bf16.mxu1 %v4290_v0  ;;  %p434_p10 = scmp.lt.s32.totalorder %s3616_s27, 15  ;;  %p444_p11 = scmp.lt.s32.totalorder %s4436_s11, 1  ;;  %3991 = vmatprep.subr.bf16.mxu0 %v4291_v1  ;;  %v4583_v2 = vld [vmem:[%s5848_s3 + $0x28] sm:$0xff]   ;;  %v4591_v3 = vld [vmem:[%s5848_s3] sm:$0xff]   ;;  %vm575_vm2 = vsmask.f32 3328 }
  0x18   : > { %3920 = vmatpush3.bf16.msra.mxu1 %v4290_v0  ;;  %s4576_s18 = scalar_select %p432_p9, %s4440_s12, 1  ;;  %3992 = vmatpush3.bf16.msra.mxu0 %v4291_v1  ;;  %vm576_vm3 = vsmask.f32 7440  ;;  %vm803_vm4 = vcmask 130048   ;;  %vm1100_vm6 = vcmask 1042432   ;;  %vm1101_vm7 = vcmask 1046532  }
  0x19   : > { %s5888_s27 = smov (!%p434_p10, %s3616_s27), 15  ;;  %4009 = vmatprep.subr.bf16.mxu0 %v4583_v2  ;;  %3937 = vmatprep.subr.bf16.mxu1 %v4591_v3  ;;  %vm4674_vm5 = vmor %vm575_vm2, %vm576_vm3  ;;  %vm2828_vm9 = vcmask 23552  }
  0x1a   : > { %s4228_s22 = smul.u32 48, %s4576_s18  ;;  %vm4858_vm8 = vmor %vm1100_vm6, %vm1101_vm7  ;;  %s3624_s26 = sshll.u32 %s4576_s18, 5 }
  0x1b   : > { %s4227_s23 = smul.u32 3, %s5888_s27 }
  0x1c   : > { %s445_s28 = scalar_select %p444_p11, %s4436_s11, 1 }
  0x1d   : > { %s438_s29 = sadd.s32 %s4228_s22, %s4227_s23  ;;  %s4230_s17 = smul.u32 6, %s4576_s18 }
  0x1e   : > { %s3617_s16 = sshll.u32 %s438_s29, 2  ;;  %s4229_s19 = smul.u32 3, %s445_s28 }
  0x1f   : > { %s4599_s13 = scalar_lea.vmem %s5845_s0, %s3617_s16  ;;  %s3828_s29 = sshll.u32 %s5888_s27, 4 }
  0x20   : > { %s4601_s22 = sadd.s32 %s4230_s17, %s4229_s19  ;;  %v487_v4 = vld [vmem:[%s4599_s13] sm:$0xf]  ;;  %v488_v5 = vld [vmem:[%s4599_s13 + $0x4] sm:$0xf]  ;;  %v489_v6 = vld [vmem:[%s4599_s13 + $0x8] sm:$0x1] }
  0x21   : > { %s3618_s23 = sshll.u32 %s4601_s22, 2  ;;  %512 = vst.msk [vmem:[#allocation2 + $0xc] sm:$0xf] %vm482_vm0, %v487_v4  ;;  %513 = vst.msk [vmem:[#allocation2 + $0x10] sm:$0xf] %vm482_vm0, %v488_v5  ;;  %s5119_s22 = scalar_lea.vmem %s5852_s7, %s3828_s29 }
  0x22   : > { %v490_v7 = vld [vmem:[%s4599_s13 + $0xc] sm:$0xf]  ;;  %s450_s25 = scalar_lea.vmem %s5846_s1, %s3618_s23  ;;  %514 = vst.msk [vmem:[#allocation2 + $0x14] sm:$0x1] %vm485_vm1, %v489_v6  ;;  %v491_v8 = vld [vmem:[%s4599_s13 + $0x10] sm:$0xf]  ;;  %s4728_s19 = scalar_lea.vmem %s5847_s2, %s3618_s23 }
  0x23   : > { %v492_v9 = vld [vmem:[%s4599_s13 + $0x14] sm:$0x1]  ;;  %515 = vst.msk [vmem:[#allocation2 + $0x18] sm:$0xf] %vm482_vm0, %v490_v7  ;;  %v493_v10 = vld [vmem:[%s4599_s13 + $0x18] sm:$0xf] }
  0x24   : > { %v479_v11 = vld [vmem:[%s450_s25] sm:$0xf]  ;;  %v480_v12 = vld [vmem:[%s450_s25 + $0x4] sm:$0xf]  ;;  %516 = vst.msk [vmem:[#allocation2 + $0x1c] sm:$0xf] %vm482_vm0, %v491_v8 }
  0x25   : > { %517 = vst.msk [vmem:[#allocation2 + $0x20] sm:$0x1] %vm485_vm1, %v492_v9  ;;  %v481_v13 = vld [vmem:[%s450_s25 + $0x8] sm:$0x1]  ;;  %v494_v14 = vld [vmem:[%s4599_s13 + $0x1c] sm:$0xf] }
  0x26   : > { %518 = vst.msk [vmem:[#allocation2 + $0x24] sm:$0xf] %vm482_vm0, %v493_v10  ;;  %483 = vst.msk [vmem:[#allocation2] sm:$0xf] %vm482_vm0, %v479_v11  ;;  %v495_v15 = vld [vmem:[%s4599_s13 + $0x20] sm:$0x1] }
  0x27   : > { %484 = vst.msk [vmem:[#allocation2 + $0x4] sm:$0xf] %vm482_vm0, %v480_v12  ;;  %519 = vst.msk [vmem:[#allocation2 + $0x28] sm:$0xf] %vm482_vm0, %v494_v14  ;;  %v496_v16 = vld [vmem:[%s4599_s13 + $0x24] sm:$0xf] }
  0x28   : > { %486 = vst.msk [vmem:[#allocation2 + $0x8] sm:$0x1] %vm485_vm1, %v481_v13  ;;  %520 = vst.msk [vmem:[#allocation2 + $0x2c] sm:$0x1] %vm485_vm1, %v495_v15  ;;  %v497_v17 = vld [vmem:[%s4599_s13 + $0x28] sm:$0xf] }
  0x29   : > { %v498_v18 = vld [vmem:[%s4599_s13 + $0x2c] sm:$0x1]  ;;  %521 = vst.msk [vmem:[#allocation2 + $0x30] sm:$0xf] %vm482_vm0, %v496_v16  ;;  %522 = vst.msk [vmem:[#allocation2 + $0x34] sm:$0xf] %vm482_vm0, %v497_v17 }
  0x2a   : > { %523 = vst.msk [vmem:[#allocation2 + $0x38] sm:$0x1] %vm485_vm1, %v498_v18  ;;  %v499_v19 = vld [vmem:[%s4599_s13 + $0x30] sm:$0xf]  ;;  %v500_v20 = vld [vmem:[%s4599_s13 + $0x34] sm:$0xf] }
  0x2b   : > { %v501_v21 = vld [vmem:[%s4599_s13 + $0x38] sm:$0x1]  ;;  %524 = vst.msk [vmem:[#allocation2 + $0x3c] sm:$0xf] %vm482_vm0, %v499_v19  ;;  %525 = vst.msk [vmem:[#allocation2 + $0x40] sm:$0xf] %vm482_vm0, %v500_v20 }
  0x2c   : > { %v502_v22 = vld [vmem:[%s4599_s13 + $0x3c] sm:$0xf]  ;;  %v503_v23 = vld [vmem:[%s4599_s13 + $0x40] sm:$0xf]  ;;  %v4643_v24 = vld [vmem:[#allocation2 + $0xc] sm:$0xf] }
  0x2d   : > { %v4645_v25 = vld [vmem:[#allocation2 + $0x10] sm:$0xf]  ;;  %526 = vst.msk [vmem:[#allocation2 + $0x44] sm:$0x1] %vm485_vm1, %v501_v21  ;;  %v504_v26 = vld [vmem:[%s4599_s13 + $0x44] sm:$0x1] }
  0x2e   : > { %527 = vst.msk [vmem:[#allocation2 + $0x48] sm:$0xf] %vm482_vm0, %v502_v22  ;;  %528 = vst.msk [vmem:[#allocation2 + $0x4c] sm:$0xf] %vm482_vm0, %v503_v23  ;;  %v4651_v27 = vld [vmem:[#allocation2 + $0x14] sm:$0x1] }
  0x2f   : > { %v603_v28 = vshrl.u32 %v4643_v24, 16  ;;  %v606_v29 = vshll.u32 %v4643_v24, 16  ;;  %v612_v30 = vshll.u32 %v4645_v25, 16  ;;  %529 = vst.msk [vmem:[#allocation2 + $0x50] sm:$0x1] %vm485_vm1, %v504_v26  ;;  %v616_v31 = vshrl.u32 %v4645_v25, 16 }
  0x30   : > { %v622_v32 = vshll.u32 %v4651_v27, 16  ;;  %v4659_v33 = vld [vmem:[#allocation2] sm:$0xf]  ;;  %v4661_v34 = vld [vmem:[#allocation2 + $0x4] sm:$0xf]  ;;  %v3663_v16 = vrot.slane %v4643_v24, 9 }
  0x31   : > { %v605_v35 = vrot.slane %v603_v28, 4  ;;  %v608_v36 = vrot.slane %v606_v29, 5  ;;  %v4663_v37 = vld [vmem:[#allocation2 + $0x8] sm:$0x1]  ;;  %v579_v38 = vshrl.u32 %v4659_v33, 16  ;;  %v582_v39 = vshll.u32 %v4659_v33, 16 }
  0x32   : > { %v588_v40 = vshll.u32 %v4661_v34, 16  ;;  %v592_v41 = vshrl.u32 %v4661_v34, 16  ;;  %v598_v42 = vshll.u32 %v4663_v37, 16  ;;  %v614_v44 = vrot.slane %v612_v30, 5  ;;  %v4670_v45 = vld [vmem:[#allocation2 + $0x18] sm:$0xf] }
  0x33   : > { %v609_v43 = vor.u32 %v608_v36, %v605_v35  ;;  %v581_v47 = vrot.slane %v579_v38, 4  ;;  %v584_v48 = vrot.slane %v582_v39, 5  ;;  %v4678_v51 = vld [vmem:[#allocation2 + $0x1c] sm:$0xf]  ;;  %v618_v54 = vrot.slane %v616_v31, 4  ;;  %v4707_v23 = vld [vmem:[%s5848_s3 + $0x10] sm:$0xff]  }
  0x34   : > { %v590_v49 = vrot.slane %v588_v40, 5  ;;  %v594_v50 = vrot.slane %v592_v41, 4  ;;  %v600_v52 = vrot.slane %v598_v42, 5  ;;  %v624_v55 = vrot.slane %v622_v32, 5  ;;  %v4680_v58 = vld [vmem:[#allocation2 + $0x20] sm:$0x1] }
  0x35   : > { %v610_v53 = vrot.slane %v609_v43, 4  ;;  %v585_v56 = vor.u32 %v584_v48, %v581_v47  ;;  %v627_v59 = vshrl.u32 %v4670_v45, 16  ;;  %v630_v60 = vshll.u32 %v4670_v45, 16  ;;  %v4689_v11 = vld [vmem:[#allocation2 + $0x24] sm:$0xf]  ;;  %s4455_s27 = smov 3  }
  0x36   : > { %v595_v57 = vor.u32 %v594_v50, %v590_v49  ;;  %v619_v62 = vor.u32 %v618_v54, %v614_v44  ;;  %v636_v63 = vshll.u32 %v4678_v51, 16  ;;  %v640_v0 = vshrl.u32 %v4678_v51, 16  ;;  %v4695_v15 = vld [vmem:[#allocation2 + $0x28] sm:$0xf]  ;;  %v4700_v21 = vld [vmem:[#allocation2 + $0x2c] sm:$0x1] }
  0x37   : > { %v615_v61 = vsel %vm4674_vm5, %v610_v53, %v614_v44  ;;  %v586_v1 = vrot.slane %v585_v56, 4  ;;  %v629_v5 = vrot.slane %v627_v59, 4  ;;  %v632_v6 = vrot.slane %v630_v60, 5  ;;  %v4702_v22 = vld [vmem:[#allocation2 + $0x30] sm:$0xf]  ;;  %s5254_s17 = sshll.u32 %s4436_s11, 4 }
  0x38   : > { %v596_v4 = vrot.slane %v595_v57, 4  ;;  %v620_v7 = vrot.slane %v619_v62, 4  ;;  %v638_v8 = vrot.slane %v636_v63, 5  ;;  %v642_v9 = vrot.slane %v640_v0, 4  ;;  %v4710_v30 = vld [vmem:[#allocation2 + $0x34] sm:$0xf] }
  0x39   : > { %v646_v10 = vshll.u32 %v4680_v58, 16  ;;  %v591_v12 = vsel %vm4674_vm5, %v586_v1, %v590_v49  ;;  %v633_v14 = vor.u32 %v632_v6, %v629_v5  ;;  %v651_v29 = vshrl.u32 %v4689_v11, 16  ;;  %v505_v31 = vld [vmem:[%s4599_s13 + $0x48] sm:$0xf]  ;;  %v4717_v39 = vld [vmem:[#allocation2 + $0x38] sm:$0x1] }
  0x3a   : > { %v601_v13 = vsel %vm4674_vm5, %v596_v4, %v600_v52  ;;  %v625_v18 = vsel %vm4674_vm5, %v620_v7, %v624_v55  ;;  %v643_v19 = vor.u32 %v642_v9, %v638_v8  ;;  %v654_v35 = vshll.u32 %v4689_v11, 16  ;;  %v4719_v40 = vld [vmem:[#allocation2 + $0x3c] sm:$0xf]  ;;  %v506_v41 = vld [vmem:[%s4599_s13 + $0x4c] sm:$0xf]  ;;  %v4753_v62 = vld [vmem:[%s5848_s3 + $0x30] sm:$0xff]  }
  0x3b   : > { %v3628_v17 = vcombine.low %v591_v12, %v601_v13  ;;  %v648_v20 = vrot.slane %v646_v10, 5  ;;  %v3629_v26 = vcombine.low %v615_v61, %v625_v18  ;;  %v634_v28 = vrot.slane %v633_v14, 4  ;;  %530 = vst.msk [vmem:[#allocation2 + $0x54] sm:$0xf] %vm482_vm0, %v505_v31  ;;  %v507_v48 = vld [vmem:[%s4599_s13 + $0x50] sm:$0x1] }
  0x3c   : > { %v644_v32 = vrot.slane %v643_v19, 4  ;;  %v660_v36 = vshll.u32 %v4695_v15, 16  ;;  %v664_v38 = vshrl.u32 %v4695_v15, 16  ;;  %v653_v43 = vrot.slane %v651_v29, 4  ;;  %531 = vst.msk [vmem:[#allocation2 + $0x58] sm:$0xf] %vm482_vm0, %v506_v41 }
  0x3d   : > { %3921 = vmatprep.mubr.msk.bf16.mxu1 %vm803_vm4, %v3628_v17  ;;  %3993 = vmatprep.mubr.msk.bf16.mxu0 %vm803_vm4, %v3629_v26  ;;  %v639_v42 = vsel %vm4674_vm5, %v634_v28, %v638_v8  ;;  %v670_v44 = vshll.u32 %v4700_v21, 16  ;;  %v675_v47 = vshrl.u32 %v4702_v22, 16  ;;  %v656_v50 = vrot.slane %v654_v35, 5  ;;  %532 = vst.msk [vmem:[#allocation2 + $0x5c] sm:$0x1] %vm485_vm1, %v507_v48  ;;  %p470_p12 = scmp.lt.s32.totalorder %s5254_s17, 31 }
  0x3e   : > { %3922 = vmatmul.mubr.msk.bf16.vlgmr.msra.gmra.mrb[0].mxu1 %vm803_vm4, %v3629_v26  ;;  %v649_v49 = vsel %vm4674_vm5, %v644_v32, %v648_v20  ;;  %v662_v52 = vrot.slane %v660_v36, 5  ;;  %v666_v53 = vrot.slane %v664_v38, 4  ;;  %v508_v54 = vld [vmem:[%s4599_s13 + $0x54] sm:$0xf]  ;;  %v678_v59 = vshll.u32 %v4702_v22, 16  ;;  %s4456_s18 = smov 122  }
  0x3f   : > { %3938 = vmatpush3.bf16.msra.mxu1 %v4591_v3  ;;  %v4743_v55 = vcombine.low %v639_v42, %v649_v49  ;;  %v672_v56 = vrot.slane %v670_v44, 5  ;;  %v677_v57 = vrot.slane %v675_v47, 4  ;;  %v4746_v60 = vld [vmem:[#allocation2 + $0x40] sm:$0xf]  ;;  %v509_v61 = vld [vmem:[%s4599_s13 + $0x58] sm:$0xf]  ;;  %v657_v3 = vor.u32 %v656_v50, %v653_v43 }
  0x40   : > { %533 = vst.msk [vmem:[#allocation2 + $0x60] sm:$0xf] %vm482_vm0, %v508_v54  ;;  %3955 = vmatprep.subr.bf16.mxu1 %v4707_v23  ;;  %v667_v63 = vor.u32 %v666_v53, %v662_v52  ;;  %v684_v0 = vshll.u32 %v4710_v30, 16  ;;  %v688_v1 = vshrl.u32 %v4710_v30, 16  ;;  %v510_v4 = vld [vmem:[%s4599_s13 + $0x5c] sm:$0x1] }
  0x41   : > { %534 = vst.msk [vmem:[#allocation2 + $0x64] sm:$0xf] %vm482_vm0, %v509_v61  ;;  %v536_v5 = vld [vmem:[%s4728_s19] sm:$0xf]  ;;  %3994 = vmatmul.mubr.msk.bf16.vlgmr.msra.gmra.mrb[0].mxu0 %vm803_vm4, %v4743_v55  ;;  %3925 = vmatprep.mubr.msk.bf16.mxu1 %vm803_vm4, %v4743_v55  ;;  %v680_v6 = vrot.slane %v678_v59, 5  ;;  %v694_v7 = vshll.u32 %v4717_v39, 16 }
  0x42   : > { %v4766_v8 = vld [vmem:[#allocation2 + $0x44] sm:$0x1]  ;;  %v699_v9 = vshrl.u32 %v4719_v40, 16  ;;  %v702_v10 = vshll.u32 %v4719_v40, 16  ;;  %535 = vst.msk [vmem:[#allocation2 + $0x68] sm:$0x1] %vm485_vm1, %v510_v4  ;;  %4010 = vmatpush3.bf16.msra.mxu0 %v4583_v2 }
  0x43   : > { %v537_v12 = vld [vmem:[%s4728_s19 + $0x4] sm:$0xf]  ;;  %540 = vst.msk [vmem:[#allocation2 + $0x6c] sm:$0xf] %vm482_vm0, %v536_v5  ;;  %v658_v13 = vrot.slane %v657_v3, 4  ;;  %v668_v14 = vrot.slane %v667_v63, 4  ;;  %v681_v19 = vor.u32 %v680_v6, %v677_v57  ;;  %4027 = vmatprep.subr.bf16.mxu0 %v4753_v62 }
  0x44   : > { %v686_v17 = vrot.slane %v684_v0, 5  ;;  %v690_v18 = vrot.slane %v688_v1, 4  ;;  %541 = vst.msk [vmem:[#allocation2 + $0x70] sm:$0xf] %vm482_vm0, %v537_v12  ;;  %v696_v20 = vrot.slane %v694_v7, 5  ;;  %v701_v26 = vrot.slane %v699_v9, 4 }
  0x45   : > { %v704_v28 = vrot.slane %v702_v10, 5  ;;  %v4775_v29 = vld [vmem:[#allocation2 + $0x48] sm:$0xf]  ;;  %v663_v31 = vsel %vm4674_vm5, %v658_v13, %v662_v52  ;;  %v673_v2 = vsel %vm4674_vm5, %v668_v14, %v672_v56  ;;  %v708_v35 = vshll.u32 %v4746_v60, 16  ;;  %v4787_v44 = vld [vmem:[#allocation2 + $0x4c] sm:$0xf] }
  0x46   : > { %v691_v32 = vor.u32 %v690_v18, %v686_v17  ;;  %v538_v36 = vld [vmem:[%s4728_s19 + $0x8] sm:$0x1]  ;;  %v4784_v38 = vcombine.low %v663_v31, %v673_v2  ;;  %v682_v41 = vrot.slane %v681_v19, 4  ;;  %v712_v43 = vshrl.u32 %v4746_v60, 16  ;;  %v4791_v50 = vld [vmem:[#allocation2 + $0x50] sm:$0x1] }
  0x47   : > { %v705_v42 = vor.u32 %v704_v28, %v701_v26  ;;  %542 = vst.msk [vmem:[#allocation2 + $0x74] sm:$0x1] %vm485_vm1, %v538_v36  ;;  %v710_v48 = vrot.slane %v708_v35, 5  ;;  %v718_v49 = vshll.u32 %v4766_v8, 16  ;;  %v723_v52 = vshrl.u32 %v4775_v29, 16  ;;  %s4454_s13 = smov 125  }
  0x48   : > { %v692_v47 = vrot.slane %v691_v32, 4  ;;  %3926 = vmatmul.mubr.msk.bf16.gmra.mrb[4].mxu1 %vm803_vm4, %v4784_v38  ;;  %3997 = vmatprep.mubr.msk.bf16.mxu0 %vm803_vm4, %v4784_v38  ;;  %v687_v53 = vsel %vm4674_vm5, %v682_v41, %v686_v17  ;;  %v714_v56 = vrot.slane %v712_v43, 4  ;;  %v726_v57 = vshll.u32 %v4775_v29, 16  ;;  %v4801_v59 = vld [vmem:[#allocation2 + $0x54] sm:$0xf]  ;;  %s5282_s11 = scalar_select %p470_p12, %s5254_s17, 31 }
  0x49   : > { %v706_v54 = vrot.slane %v705_v42, 4  ;;  %v720_v3 = vrot.slane %v718_v49, 5  ;;  %v725_v63 = vrot.slane %v723_v52, 4  ;;  %v732_v0 = vshll.u32 %v4787_v44, 16  ;;  %v4806_v1 = vld [vmem:[#allocation2 + $0x58] sm:$0xf] }
  0x4a   : > { %v697_v61 = vsel %vm4674_vm5, %v692_v47, %v696_v20  ;;  %v715_v6 = vor.u32 %v714_v56, %v710_v48  ;;  %v728_v7 = vrot.slane %v726_v57, 5  ;;  %v736_v10 = vshrl.u32 %v4787_v44, 16  ;;  %v4819_v18 = vld [vmem:[#allocation2 + $0x5c] sm:$0x1]  ;;  %v4824_v32 = vld [vmem:[#allocation2 + $0x60] sm:$0xf]  ;;  %s5310_s28 = sadd.s32 %s3624_s26, %s5282_s11 }
  0x4b   : > { %v4808_v4 = vcombine.low %v687_v53, %v697_v61  ;;  %v711_v5 = vsel %vm4674_vm5, %v706_v54, %v710_v48  ;;  %v734_v9 = vrot.slane %v732_v0, 5  ;;  %v742_v12 = vshll.u32 %v4791_v50, 16  ;;  %v4828_v43 = vld [vmem:[#allocation2 + $0x64] sm:$0xf]  ;;  %v4835_v56 = vld [vmem:[#allocation2 + $0x68] sm:$0x1] }
  0x4c   : > { %v747_v13 = vshrl.u32 %v4801_v59, 16  ;;  %v716_v14 = vrot.slane %v715_v6, 4  ;;  %v729_v17 = vor.u32 %v728_v7, %v725_v63  ;;  %v750_v19 = vshll.u32 %v4801_v59, 16  ;;  %s3625_s29 = sshll.u32 %s5310_s28, 3 }
  0x4d   : > { %3998 = vmatmul.mubr.msk.bf16.gmra.mrb[4].mxu0 %vm803_vm4, %v4808_v4  ;;  %3929 = vmatprep.mubr.msk.bf16.mxu1 %vm803_vm4, %v4808_v4  ;;  %v756_v20 = vshll.u32 %v4806_v1, 16  ;;  %v738_v26 = vrot.slane %v736_v10, 4  ;;  %v744_v28 = vrot.slane %v742_v12, 5  ;;  %v760_v2 = vshrl.u32 %v4806_v1, 16 }
  0x4e   : > { %v749_v31 = vrot.slane %v747_v13, 4  ;;  %v721_v35 = vsel %vm4674_vm5, %v716_v14, %v720_v3  ;;  %v730_v36 = vrot.slane %v729_v17, 4  ;;  %v752_v41 = vrot.slane %v750_v19, 5 }
  0x4f   : > { %v758_v42 = vrot.slane %v756_v20, 5  ;;  %v4830_v47 = vcombine.low %v711_v5, %v721_v35  ;;  %v739_v48 = vor.u32 %v738_v26, %v734_v9  ;;  %v762_v49 = vrot.slane %v760_v2, 4 }
  0x50   : > { %v766_v52 = vshll.u32 %v4819_v18, 16  ;;  %v735_v53 = vsel %vm4674_vm5, %v730_v36, %v734_v9  ;;  %v753_v54 = vor.u32 %v752_v41, %v749_v31  ;;  %v1460_v57 = vshrl.u32 %v4824_v32, 16 }
  0x51   : > { %v1463_v61 = vshll.u32 %v4824_v32, 16  ;;  %3930 = vmatmul.mubr.msk.bf16.gmra.mrb[8].mxu1 %vm803_vm4, %v4830_v47  ;;  %4001 = vmatprep.mubr.msk.bf16.mxu0 %vm803_vm4, %v4830_v47  ;;  %v740_v3 = vrot.slane %v739_v48, 4  ;;  %v763_v63 = vor.u32 %v762_v49, %v758_v42  ;;  %v1469_v5 = vshll.u32 %v4828_v43, 16 }
  0x52   : > { %v768_v0 = vrot.slane %v766_v52, 5  ;;  %v754_v6 = vrot.slane %v753_v54, 4  ;;  %v1462_v7 = vrot.slane %v1460_v57, 4  ;;  %v1473_v10 = vshrl.u32 %v4828_v43, 16 }
  0x53   : > { %v1465_v9 = vrot.slane %v1463_v61, 5  ;;  %v745_v12 = vsel %vm4674_vm5, %v740_v3, %v744_v28  ;;  %v764_v13 = vrot.slane %v763_v63, 4  ;;  %v1471_v14 = vrot.slane %v1469_v5, 5  ;;  %v2364_v28 = vld [vmem:[%s5119_s22] sm:$0xff] }
  0x54   : > { %v1479_v17 = vshll.u32 %v4835_v56, 16  ;;  %v4848_v19 = vcombine.low %v735_v53, %v745_v12  ;;  %v759_v20 = vsel %vm4674_vm5, %v754_v6, %v758_v42  ;;  %v1475_v31 = vrot.slane %v1473_v10, 4  ;;  %2396 = vrot.lane.b32.xlu0 %v2364_v28, %s4454_s13 }
  0x55   : > { %v1466_v26 = vor.u32 %v1465_v9, %v1462_v7  ;;  %v769_v2 = vsel %vm4674_vm5, %v764_v13, %v768_v0  ;;  %v3645_v36 = vcombine.low %v4659_v33, %v4661_v34  ;;  %v1112_v41 = vrot.slane %v4645_v25, 5 }
  0x56   : > { %v1481_v35 = vrot.slane %v1479_v17, 5  ;;  %4002 = vmatmul.mubr.msk.bf16.gmra.mrb[8].mxu0 %vm803_vm4, %v4848_v19  ;;  %3933 = vmatprep.mubr.msk.bf16.mxu1 %vm803_vm4, %v4848_v19  ;;  %v4867_v42 = vcombine.low %v759_v20, %v769_v2  ;;  %v1476_v49 = vor.u32 %v1475_v31, %v1471_v14  ;;  %v1115_v52 = vrot.slane %v4651_v27, 5 }
  0x57   : > { %v1467_v48 = vrot.slane %v1466_v26, 4  ;;  %v1119_v53 = vrot.slane %v4678_v51, 5  ;;  %v1114_v54 = vrot.slane %v1112_v41, 4  ;;  %v1113_v3 = vsel %vm4858_vm8, %v3663_v16, %v1112_v41 }
  0x58   : > { %4005 = vmatprep.mubr.msk.bf16.mxu0 %vm803_vm4, %v4867_v42  ;;  %v1477_v61 = vrot.slane %v1476_v49, 4  ;;  %v1126_v63 = vrot.slane %v4695_v15, 5  ;;  %v1122_v0 = vrot.slane %v4680_v58, 5  ;;  %v3664_v16 = vrot.slane %v4670_v45, 9 }
  0x59   : > { %v1472_v57 = vsel %vm4674_vm5, %v1467_v48, %v1471_v14  ;;  %3934 = vmatmul.mubr.msk.bf16.gmra.mrb[12].mxu1 %vm803_vm4, %v4867_v42  ;;  %v1116_v27 = vsel %vm4858_vm8, %v1114_v54, %v1115_v52  ;;  %v1121_v9 = vrot.slane %v1119_v53, 4  ;;  %v3665_v10 = vrot.slane %v4689_v11, 9 }
  0x5a   : > { %v1482_v5 = vsel %vm4674_vm5, %v1477_v61, %v1481_v35  ;;  %3939 = vmatprep.mubr.msk.bf16.mxu1 %vm803_vm4, %v3645_v36  ;;  %v4890_v7 = vcombine.low %v1113_v3, %v1116_v27  ;;  %v1128_v12 = vrot.slane %v1126_v63, 4  ;;  %v1129_v13 = vrot.slane %v4700_v21, 5 }
  0x5b   : > { %v4888_v6 = vcombine.low %v1472_v57, %v1482_v5  ;;  %v4897_v58 = vcombine.low %v4643_v24, %v4645_v25  ;;  %v4903_v14 = vcombine.low %v4670_v45, %v4678_v51  ;;  %v1120_v17 = vsel %vm4858_vm8, %v3664_v16, %v1119_v53  ;;  %v4915_v24 = vld [vmem:[%s5848_s3 + $0x18] sm:$0xff]  }
  0x5c   : > { %v1123_v21 = vsel %vm4858_vm8, %v1121_v9, %v1122_v0  ;;  %v1133_v20 = vrot.slane %v4710_v30, 5  ;;  %v1127_v25 = vsel %vm4858_vm8, %v3665_v10, %v1126_v63  ;;  %v1130_v45 = vsel %vm4858_vm8, %v1128_v12, %v1129_v13 }
  0x5d   : > { %v1140_v51 = vrot.slane %v4746_v60, 5  ;;  %v1108_v26 = vrot.slane %v4663_v37, 5  ;;  %v4925_v31 = vcombine.low %v1120_v17, %v1123_v21  ;;  %v3666_v2 = vrot.slane %v4702_v22, 9 }
  0x5e   : > { %4006 = vmatmul.mubr.msk.bf16.gmra.mrb[12].mxu0 %vm803_vm4, %v4888_v6  ;;  %v4931_v35 = vcombine.low %v1127_v25, %v1130_v45  ;;  %v1135_v36 = vrot.slane %v1133_v20, 4  ;;  %v1136_v41 = vrot.slane %v4717_v39, 5  ;;  %v3662_v48 = vrot.slane %v4659_v33, 9 }
  0x5f   : > { %4011 = vmatprep.mubr.msk.bf16.mxu0 %vm803_vm4, %v4890_v7  ;;  %v3667_v37 = vrot.slane %v4719_v40, 9  ;;  %v1142_v49 = vrot.slane %v1140_v51, 4  ;;  %v1143_v52 = vrot.slane %v4766_v8, 5  ;;  %v1105_v53 = vrot.slane %v4661_v34, 5 }
  0x60   : > { %v4944_v54 = vcombine.low %v4689_v11, %v4695_v15  ;;  %v4948_v33 = vcombine.low %v4824_v32, %v4828_v43  ;;  %v4954_v39 = vcombine.low %v4702_v22, %v4710_v30  ;;  %v1134_v11 = vsel %vm4858_vm8, %v3666_v2, %v1133_v20 }
  0x61   : > { %3940 = vmatmul.mubr.msk.bf16.vlgmr.msra.gmra.mrb[0].mxu1 %vm803_vm4, %v4897_v58  ;;  %v1106_v34 = vsel %vm4858_vm8, %v3662_v48, %v1105_v53  ;;  %v1107_v8 = vrot.slane %v1105_v53, 4  ;;  %v1137_v15 = vsel %vm4858_vm8, %v1135_v36, %v1136_v41  ;;  %v1147_v57 = vrot.slane %v4787_v44, 5 }
  0x62   : > { %3943 = vmatprep.mubr.msk.bf16.mxu1 %vm803_vm4, %v4903_v14  ;;  %3956 = vmatpush3.bf16.msra.mxu1 %v4707_v23  ;;  %v4296_v23 = vld [vmem:[%s5848_s3 + $0x38] sm:$0xff]   ;;  %v1141_v22 = vsel %vm4858_vm8, %v3667_v37, %v1140_v51  ;;  %v1144_v30 = vsel %vm4858_vm8, %v1142_v49, %v1143_v52  ;;  %v1154_v61 = vrot.slane %v4806_v1, 5  ;;  %v4975_v27 = vcombine.low %v1134_v11, %v1137_v15  ;;  %v572_v37 = vld [vmem:[#allocation2 + $0x74] sm:$0x1]  ;;  %v2365_v11 = vld [vmem:[%s5119_s22 + $0x8] sm:$0xff] }
  0x63   : > { %3973 = vmatprep.subr.bf16.mxu1 %v4915_v24  ;;  %v4979_v63 = vcombine.low %v1141_v22, %v1144_v30  ;;  %v3668_v0 = vrot.slane %v4775_v29, 9  ;;  %v1149_v5 = vrot.slane %v1147_v57, 4  ;;  %v1150_v16 = vrot.slane %v4791_v50, 5  ;;  %v2367_v15 = vld [vmem:[%s5119_s22 + $0x18] sm:$0xff]  ;;  %2398 = vrot.lane.b32.xlu0 %v2365_v11, %s4454_s13  ;;  %v2369_v22 = vld [vmem:[%s5119_s22 + $0x28] sm:$0xff]  ;;  %v2370_v30 = vld [vmem:[%s5119_s22 + $0x30] sm:$0xff] }
  0x64   : > { %v3669_v9 = vrot.slane %v4801_v59, 9  ;;  %v1156_v10 = vrot.slane %v1154_v61, 4  ;;  %v1157_v12 = vrot.slane %v4819_v18, 5  ;;  %v3650_v13 = vcombine.low %v4719_v40, %v4746_v60 }
  0x65   : > { %v4991_v17 = vcombine.low %v4775_v29, %v4787_v44  ;;  %v1148_v50 = vsel %vm4858_vm8, %v3668_v0, %v1147_v57  ;;  %v1151_v21 = vsel %vm4858_vm8, %v1149_v5, %v1150_v16  ;;  %v1614_v18 = vrot.slane %v4828_v43, 5  ;;  %v2368_v57 = vld [vmem:[%s5119_s22 + $0x20] sm:$0xff]  ;;  %v2377_v5 = vld [vmem:[%s5119_s22 + $0x68] sm:$0xff]  ;;  %v2378_v16 = vld [vmem:[%s5119_s22 + $0x70] sm:$0xff] }
  0x66   : > { %4012 = vmatmul.mubr.msk.bf16.vlgmr.msra.gmra.mrb[0].mxu0 %vm803_vm4, %v4925_v31  ;;  %v1155_v40 = vsel %vm4858_vm8, %v3669_v9, %v1154_v61  ;;  %v1158_v60 = vsel %vm4858_vm8, %v1156_v10, %v1157_v12  ;;  %v5005_v29 = vcombine.low %v1148_v50, %v1151_v21  ;;  %v3713_v20 = vrot.slane %v4824_v32, 9  ;;  %v2371_v61 = vld [vmem:[%s5119_s22 + $0x38] sm:$0xff]  ;;  %v2376_v0 = vld [vmem:[%s5119_s22 + $0x60] sm:$0xff] }
  0x67   : > { %4028 = vmatpush3.bf16.msra.mxu0 %v4753_v62  ;;  %4015 = vmatprep.mubr.msk.bf16.mxu0 %vm803_vm4, %v4931_v35  ;;  %v1109_v62 = vsel %vm4858_vm8, %v1107_v8, %v1108_v26  ;;  %v5009_v44 = vcombine.low %v1155_v40, %v1158_v60  ;;  %v1616_v25 = vrot.slane %v1614_v18, 4  ;;  %v1617_v43 = vrot.slane %v4835_v56, 5  ;;  %v571_v56 = vld [vmem:[#allocation2 + $0x70] sm:$0xf]  ;;  %v2379_v9 = vld [vmem:[%s5119_s22 + $0x78] sm:$0xff] }
  0x68   : > { %4045 = vmatprep.subr.bf16.mxu0 %v4296_v23  ;;  %v3672_v3 = vcombine.low %v1106_v34, %v1109_v62  ;;  %v3652_v45 = vcombine.low %v4801_v59, %v4806_v1  ;;  %v1615_v51 = vsel %vm4858_vm8, %v3713_v20, %v1614_v18  ;;  %v4300_v59 = vld [vmem:[%s5848_s3 + $0x40] sm:$0xff]   ;;  %v570_v1 = vld [vmem:[#allocation2 + $0x6c] sm:$0xf]  ;;  %v1891_v36 = vshrl.u32 %v571_v56, 16  ;;  %v2366_v8 = vld [vmem:[%s5119_s22 + $0x10] sm:$0xff]  ;;  %2404 = vrot.lane.b32.xlu0 %v2368_v57, %s4454_s13 }
  0x69   : > { %3944 = vmatmul.mubr.msk.bf16.gmra.mrb[4].mxu1 %vm803_vm4, %v4944_v54  ;;  %v1618_v26 = vsel %vm4858_vm8, %v1616_v25, %v1617_v43  ;;  %v1881_v2 = vshll.u32 %v570_v1, 16  ;;  %v2032_v46 = vrot.slane %v571_v56, 5  ;;  %v4301_v34 = vld [vmem:[%s5850_s5] sm:$0xff]   ;;  %2400 = vrot.lane.b32.xlu1 %v2366_v8, %s4454_s13 }
  0x6a   : > { %3947 = vmatprep.mubr.msk.bf16.mxu1 %vm803_vm4, %v4954_v39  ;;  %v5024_v32 = vcombine.low %v1615_v51, %v1618_v26  ;;  %v1893_v48 = vrot.slane %v1891_v36, 4  ;;  %v2372_v62 = vld [vmem:[%s5119_s22 + $0x40] sm:$0xff] }
  0x6c   : > { %2408 = vrot.lane.b32.xlu0 %v2370_v30, %s4454_s13 }
  0x6d   : > { %2402 = vrot.lane.b32.xlu1 %v2367_v15, %s4454_s13 }
  0x6e   : > { %4016 = vmatmul.mubr.msk.bf16.gmra.mrb[4].mxu0 %vm803_vm4, %v4975_v27 }
  0x6f   : > { %4019 = vmatprep.mubr.msk.bf16.mxu0 %vm803_vm4, %v4979_v63 }
  0x70   : > { %2412 = vrot.lane.b32.xlu0 %v2372_v62, %s4454_s13 }
  0x71   : > { %3948 = vmatmul.mubr.msk.bf16.gmra.mrb[8].mxu1 %vm803_vm4, %v3650_v13  ;;  %2406 = vrot.lane.b32.xlu1 %v2369_v22, %s4454_s13 }
  0x72   : > { %3951 = vmatprep.mubr.msk.bf16.mxu1 %vm803_vm4, %v4991_v17 }
  0x75   : > { %2410 = vrot.lane.b32.xlu1 %v2371_v61, %s4454_s13 }
  0x76   : > { %4020 = vmatmul.mubr.msk.bf16.gmra.mrb[8].mxu0 %vm803_vm4, %v5005_v29 }
  0x77   : > { %4023 = vmatprep.mubr.msk.bf16.mxu0 %vm803_vm4, %v5009_v44 }
  0x79   : > { %3952 = vmatmul.mubr.msk.bf16.gmra.mrb[12].mxu1 %vm803_vm4, %v3652_v45 }
  0x7a   : > { %3957 = vmatprep.mubr.msk.bf16.mxu1 %vm803_vm4, %v3672_v3  ;;  %v2373_v3 = vld [vmem:[%s5119_s22 + $0x48] sm:$0xff] }
  0x7b   : > { %2414 = vrot.lane.b32.xlu1 %v2373_v3, %s4454_s13 }
  0x7e   : > { %4024 = vmatmul.mubr.msk.bf16.gmra.mrb[12].mxu0 %vm803_vm4, %v5024_v32 }
  0x7f   : > { %4029 = vmatprep.mubr.msk.bf16.mxu0 %vm803_vm4, %v4903_v14 }
  0x81   : > { %3958 = vmatmul.mubr.msk.bf16.vlgmr.msra.gmra.mrb[0].mxu1 %vm803_vm4, %v4890_v7  ;;  %v3728_v7 = vcombine.low %v570_v1, %v571_v56 }
  0x82   : > { %3961 = vmatprep.mubr.msk.bf16.mxu1 %vm803_vm4, %v4925_v31  ;;  %3974 = vmatpush3.bf16.msra.mxu1 %v4915_v24  ;;  %v1878_v24 = vshrl.u32 %v570_v1, 16 }
  0x83   : > { %4081 = vmatprep.subr.bf16.mxu1 %v4301_v34 }
  0x86   : > { %4030 = vmatmul.mubr.msk.bf16.vlgmr.msra.gmra.mrb[0].mxu0 %vm803_vm4, %v4944_v54 }
  0x87   : > { %4046 = vmatpush3.bf16.msra.mxu0 %v4296_v23  ;;  %4033 = vmatprep.mubr.msk.bf16.mxu0 %vm803_vm4, %v4954_v39 }
  0x88   : > { %4063 = vmatprep.subr.bf16.mxu0 %v4300_v59 }
  0x89   : > { %3962 = vmatmul.mubr.msk.bf16.gmra.mrb[4].mxu1 %vm803_vm4, %v4931_v35 }
  0x8a   : > { %3965 = vmatprep.mubr.msk.bf16.mxu1 %vm803_vm4, %v4975_v27 }
  0x8e   : > { %4034 = vmatmul.mubr.msk.bf16.gmra.mrb[4].mxu0 %vm803_vm4, %v3650_v13 }
  0x8f   : > { %4037 = vmatprep.mubr.msk.bf16.mxu0 %vm803_vm4, %v4991_v17 }
  0x91   : > { %3966 = vmatmul.mubr.msk.bf16.gmra.mrb[8].mxu1 %vm803_vm4, %v4979_v63 }
  0x92   : > { %3969 = vmatprep.mubr.msk.bf16.mxu1 %vm803_vm4, %v5005_v29 }
  0x96   : > { %4038 = vmatmul.mubr.msk.bf16.gmra.mrb[8].mxu0 %vm803_vm4, %v3652_v45 }
  0x97   : > { %4041 = vmatprep.mubr.msk.bf16.mxu0 %vm803_vm4, %v4948_v33 }
  0x99   : > { %3970 = vmatmul.mubr.msk.bf16.gmra.mrb[12].mxu1 %vm803_vm4, %v5009_v44 }
  0x9a   : > { %3975 = vmatprep.mubr.msk.bf16.mxu1 %vm803_vm4, %v4897_v58  ;;  %v1887_v58 = vshll.u32 %v571_v56, 16 }
  0x9c   : > { %v1889_v41 = vrot.slane %v1887_v58, 5 }
  0x9e   : > { %4042 = vmatmul.mubr.msk.bf16.gmra.mrb[12].mxu0 %vm803_vm4, %v3728_v7  ;;  %v1894_v49 = vor.u32 %v1893_v48, %v1889_v41 }
  0x9f   : > { %4047 = vmatprep.mubr.msk.bf16.mxu0 %vm803_vm4, %v4743_v55  ;;  %v1880_v55 = vrot.slane %v1878_v24, 4 }
  0xa0   : > { %v1895_v53 = vrot.slane %v1894_v49, 4 }
  0xa1   : > { %3976 = vmatmul.mubr.msk.bf16.vlgmr.msra.gmra.mrb[0].mxu1 %vm803_vm4, %v4903_v14  ;;  %v1883_v14 = vrot.slane %v1881_v2, 5 }
  0xa2   : > { %3979 = vmatprep.mubr.msk.bf16.mxu1 %vm803_vm4, %v4944_v54  ;;  %4082 = vmatpush3.bf16.msra.mxu1 %v4301_v34 }
  0xa6   : > { %4048 = vmatmul.mubr.msk.bf16.vlgmr.msra.gmra.mrb[0].mxu0 %vm803_vm4, %v4784_v38  ;;  %v1884_v38 = vor.u32 %v1883_v14, %v1880_v55 }
  0xa7   : > { %4064 = vmatpush3.bf16.msra.mxu0 %v4300_v59  ;;  %4051 = vmatprep.mubr.msk.bf16.mxu0 %vm803_vm4, %v4808_v4  ;;  %v1897_v4 = vshll.u32 %v572_v37, 16 }
  0xa8   : > { %v1885_v52 = vrot.slane %v1884_v38, 4 }
  0xa9   : > { %3980 = vmatmul.mubr.msk.bf16.gmra.mrb[4].mxu1 %vm803_vm4, %v4954_v39  ;;  %v1899_v23 = vrot.slane %v1897_v4, 5 }
  0xaa   : > { %3983 = vmatprep.mubr.msk.bf16.mxu1 %vm803_vm4, %v3650_v13 }
  0xae   : > { %4052 = vmatmul.mubr.msk.bf16.gmra.mrb[4].mxu0 %vm803_vm4, %v4830_v47  ;;  %v1890_v47 = vsel %vm4674_vm5, %v1885_v52, %v1889_v41 }
  0xaf   : > { %4055 = vmatprep.mubr.msk.bf16.mxu0 %vm803_vm4, %v4848_v19  ;;  %v1900_v19 = vsel %vm4674_vm5, %v1895_v53, %v1899_v23 }
  0xb0   : > { %v3740_v54 = vcombine.low %v1890_v47, %v1900_v19 }
  0xb1   : > { %3984 = vmatmul.mubr.msk.bf16.gmra.mrb[8].mxu1 %vm803_vm4, %v4991_v17 }
  0xb2   : > { %3987 = vmatprep.mubr.msk.bf16.mxu1 %vm803_vm4, %v3652_v45 }
  0xb6   : > { %4056 = vmatmul.mubr.msk.bf16.gmra.mrb[8].mxu0 %vm803_vm4, %v4867_v42  ;;  %v3750_v42 = vrot.slane %v570_v1, 9 }
  0xb7   : > { %4059 = vmatprep.mubr.msk.bf16.mxu0 %vm803_vm4, %v4888_v6  ;;  %v2034_v6 = vrot.slane %v2032_v46, 4 }
  0xb9   : > { %3988 = vmatmul.mubr.msk.bf16.gmra.mrb[12].mxu1 %vm803_vm4, %v4948_v33  ;;  %v2035_v33 = vrot.slane %v572_v37, 5 }
  0xbe   : > { %4060 = vmatmul.mubr.msk.bf16.gmra.mrb[12].mxu0 %vm803_vm4, %v3740_v54 }
  0xbf   : > { %4065 = vmatprep.mubr.msk.bf16.mxu0 %vm803_vm4, %v4925_v31  ;;  %v2033_v31 = vsel %vm4858_vm8, %v3750_v42, %v2032_v46 }
  0xc6   : > { %4066 = vmatmul.mubr.msk.bf16.vlgmr.msra.gmra.mrb[0].mxu0 %vm803_vm4, %v4931_v35  ;;  %v2036_v35 = vsel %vm4858_vm8, %v2034_v6, %v2035_v33 }
  0xc7   : > { %4069 = vmatprep.mubr.msk.bf16.mxu0 %vm803_vm4, %v4975_v27  ;;  %v3753_v39 = vcombine.low %v2033_v31, %v2036_v35  ;;  %v2374_v27 = vld [vmem:[%s5119_s22 + $0x50] sm:$0xff] }
  0xc8   : > { %2416 = vrot.lane.b32.xlu0 %v2374_v27, %s4454_s13 }
  0xcc   : > { %2420 = vrot.lane.b32.xlu0 %v2376_v0, %s4454_s13 }
  0xce   : > { %4070 = vmatmul.mubr.msk.bf16.gmra.mrb[4].mxu0 %vm803_vm4, %v4979_v63  ;;  %v2375_v63 = vld [vmem:[%s5119_s22 + $0x58] sm:$0xff]  ;;  %s5335_s22 = scalar_lea.vmem %s5853_s8, %s3625_s29 }
  0xcf   : > { %4073 = vmatprep.mubr.msk.bf16.mxu0 %vm803_vm4, %v5005_v29  ;;  %2418 = vrot.lane.b32.xlu1 %v2375_v63, %s4454_s13 }
  0xd0   : > { %2424 = vrot.lane.b32.xlu0 %v2378_v16, %s4454_s13 }
  0xd3   : > { %2422 = vrot.lane.b32.xlu1 %v2377_v5, %s4454_s13 }
  0xd4   : > { %2460 = vrot.lane.b32.xlu0 %v2364_v28, %s4455_s27 }
  0xd6   : > { %4074 = vmatmul.mubr.msk.bf16.gmra.mrb[8].mxu0 %vm803_vm4, %v5009_v44 }
  0xd7   : > { %4077 = vmatprep.mubr.msk.bf16.mxu0 %vm803_vm4, %v5024_v32  ;;  %2426 = vrot.lane.b32.xlu1 %v2379_v9, %s4454_s13  ;;  %v5164_v32 = vld [vmem:[%s5849_s4] ss:$0 sm:$0xff] }
  0xd8   : > { %2464 = vrot.lane.b32.xlu0 %v2366_v8, %s4455_s27 }
  0xdb   : > { %2462 = vrot.lane.b32.xlu1 %v2365_v11, %s4455_s27 }
  0xdc   : > { %2468 = vrot.lane.b32.xlu0 %v2368_v57, %s4455_s27 }
  0xde   : > { %4078 = vmatmul.mubr.msk.bf16.gmra.mrb[12].mxu0 %vm803_vm4, %v3753_v39 }
  0xdf   : > { %2466 = vrot.lane.b32.xlu1 %v2367_v15, %s4455_s27 }
  0xe0   : > { %2472 = vrot.lane.b32.xlu0 %v2370_v30, %s4455_s27 }
  0xe3   : > { %2470 = vrot.lane.b32.xlu1 %v2369_v22, %s4455_s27 }
  0xe4   : > { %2476 = vrot.lane.b32.xlu0 %v2372_v62, %s4455_s27 }
  0xe7   : > { %2474 = vrot.lane.b32.xlu1 %v2371_v61, %s4455_s27 }
  0xe8   : > { %2480 = vrot.lane.b32.xlu0 %v2374_v27, %s4455_s27 }
  0xeb   : > { %2478 = vrot.lane.b32.xlu1 %v2373_v3, %s4455_s27 }
  0xec   : > { %2484 = vrot.lane.b32.xlu0 %v2376_v0, %s4455_s27 }
  0xef   : > { %2482 = vrot.lane.b32.xlu1 %v2375_v63, %s4455_s27 }
  0xf0   : > { %2488 = vrot.lane.b32.xlu0 %v2378_v16, %s4455_s27 }
  0xf3   : > { %2486 = vrot.lane.b32.xlu1 %v2377_v5, %s4455_s27 }
  0xf7   : > { %2490 = vrot.lane.b32.xlu1 %v2379_v9, %s4455_s27  ;;  %s428_s27 = sand.u32 1, %s4428_s30  }
  0xf8   : > { %s3615_s23 = sshll.u32 %s428_s27, 9 }
  0xf9   : > { %s5550_s30 = scalar_lea.vmem [#allocation3], %s3615_s23 }
 0x174   : > { %v3977_v10 = vpop.f32.mrb[0].mxu1 }
 0x175   : > { %v1380_v12 = vpop.f32.mrb[1].mxu1 }
 0x176   : > { %v3978_v13 = vpop.f32.mrb[2].mxu1 }
 0x177   : > { %v1383_v17 = vpop.f32.mrb[3].mxu1 }
 0x17c   : > { %v3981_v50 = vpop.f32.mrb[4].mxu1 }
 0x17d   : > { %v1396_v21 = vpop.f32.mrb[5].mxu1 }
 0x17e   : > { %v3982_v18 = vpop.f32.mrb[6].mxu1 }
 0x17f   : > { %v1399_v40 = vpop.f32.mrb[7].mxu1 }
 0x184   : > { %v3985_v60 = vpop.f32.mrb[8].mxu1 }
 0x185   : > { %v1412_v29 = vpop.f32.mrb[9].mxu1 }
 0x186   : > { %v3986_v44 = vpop.f32.mrb[10].mxu1 }
 0x187   : > { %v1415_v20 = vpop.f32.mrb[11].mxu1 }
 0x18c   : > { %v5153_v25 = vpop.f32.mrb[12].mxu1 }
 0x18d   : > { %v5155_v43 = vpop.f32.mrb[13].mxu1 }
 0x18e   : > { %v5157_v45 = vpop.f32.mrb[14].mxu1 }
 0x18f   : > { %v5159_v51 = vpop.f32.mrb[15].mxu1 }
 0x199   : > { %v4067_v26 = vpop.f32.mrb[0].mxu0 }
 0x19a   : > { %v4099_v59 = vadd.f32 %v4067_v26, %v3977_v10  ;;  %v2086_v1 = vpop.f32.mrb[1].mxu0 }
 0x19b   : > { %v4100_v56 = vadd.f32 %v2086_v1, %v1380_v12  ;;  %v4068_v7 = vpop.f32.mrb[2].mxu0 }
 0x19c   : > { %v2174_v24 = vadd.f32 %v4099_v59, %v5164_v32  ;;  %v4101_v2 = vadd.f32 %v4068_v7, %v3978_v13  ;;  %v2089_v36 = vpop.f32.mrb[3].mxu0 }
 0x19d   : > { %v2172_v58 = vadd.f32 %v4100_v56, %v5164_v32  ;;  %v4102_v55 = vadd.f32 %v2089_v36, %v1383_v17 }
 0x19e   : > { %v2175_v14 = vadd.f32 %v4101_v2, %v5164_v32  ;;  %v2190_v48 = vmax.f32 %v2174_v24, 0.0 }
 0x19f   : > { %v2173_v41 = vadd.f32 %v4102_v55, %v5164_v32  ;;  %v2188_v38 = vmax.f32 %v2172_v58, 0.0 }
 0x1a0   : > { %v2191_v37 = vmax.f32 %v2175_v14, 0.0 }
 0x1a1   : > { %v2189_v49 = vmax.f32 %v2173_v41, 0.0  ;;  %v4071_v4 = vpop.f32.mrb[4].mxu0 }
 0x1a2   : > { %v2205_v52 = vpack.c.bf16 %v2191_v37, %v2190_v48  ;;  %v4103_v53 = vadd.f32 %v4071_v4, %v3981_v50  ;;  %v2102_v23 = vpop.f32.mrb[5].mxu0 }
 0x1a3   : > { %v2204_v47 = vpack.c.bf16 %v2189_v49, %v2188_v38  ;;  %v4104_v19 = vadd.f32 %v2102_v23, %v1396_v21  ;;  %v4072_v54 = vpop.f32.mrb[6].mxu0 }
 0x1a4   : > { %v2178_v46 = vadd.f32 %v4103_v53, %v5164_v32  ;;  %v4105_v42 = vadd.f32 %v4072_v54, %v3982_v18  ;;  %v2105_v6 = vpop.f32.mrb[7].mxu0 }
 0x1a5   : > { %v2176_v33 = vadd.f32 %v4104_v19, %v5164_v32  ;;  %v4106_v31 = vadd.f32 %v2105_v6, %v1399_v40  ;;  %4083 = vmatprep.mubr.msk.bf16.mxu1 %vm803_vm4, %v2204_v47  ;;  %v5223_v19 = vld [vmem:[%s5851_s6] ss:$0 sm:$0xff] }
 0x1a6   : > { %v2179_v35 = vadd.f32 %v4105_v42, %v5164_v32  ;;  %4084 = vmatmul.mubr.msk.bf16.vlgmr.msra.gmra.mrb[16].mxu1 %vm803_vm4, %v2205_v52  ;;  %v2194_v34 = vmax.f32 %v2178_v46, 0.0 }
 0x1a7   : > { %v2177_v39 = vadd.f32 %v4106_v31, %v5164_v32  ;;  %v2192_v8 = vmax.f32 %v2176_v33, 0.0 }
 0x1a8   : > { %v2195_v28 = vmax.f32 %v2179_v35, 0.0 }
 0x1a9   : > { %v2193_v11 = vmax.f32 %v2177_v39, 0.0  ;;  %v4075_v15 = vpop.f32.mrb[8].mxu0 }
 0x1aa   : > { %v2207_v57 = vpack.c.bf16 %v2195_v28, %v2194_v34  ;;  %v4107_v22 = vadd.f32 %v4075_v15, %v3985_v60  ;;  %v2118_v30 = vpop.f32.mrb[9].mxu0 }
 0x1ab   : > { %v2206_v61 = vpack.c.bf16 %v2193_v11, %v2192_v8  ;;  %v4108_v62 = vadd.f32 %v2118_v30, %v1412_v29  ;;  %v4076_v3 = vpop.f32.mrb[10].mxu0 }
 0x1ac   : > { %v2182_v27 = vadd.f32 %v4107_v22, %v5164_v32  ;;  %v4109_v63 = vadd.f32 %v4076_v3, %v3986_v44  ;;  %v2121_v0 = vpop.f32.mrb[11].mxu0 }
 0x1ad   : > { %v2180_v5 = vadd.f32 %v4108_v62, %v5164_v32  ;;  %v4110_v16 = vadd.f32 %v2121_v0, %v1415_v20  ;;  %4087 = vmatprep.mubr.msk.bf16.mxu1 %vm803_vm4, %v2206_v61 }
 0x1ae   : > { %v2183_v9 = vadd.f32 %v4109_v63, %v5164_v32  ;;  %4088 = vmatmul.mubr.msk.bf16.gmra.mrb[20].mxu1 %vm803_vm4, %v2207_v57  ;;  %v2198_v12 = vmax.f32 %v2182_v27, 0.0 }
 0x1af   : > { %v2181_v10 = vadd.f32 %v4110_v16, %v5164_v32  ;;  %v2196_v17 = vmax.f32 %v2180_v5, 0.0 }
 0x1b0   : > { %v2199_v13 = vmax.f32 %v2183_v9, 0.0 }
 0x1b1   : > { %v2197_v50 = vmax.f32 %v2181_v10, 0.0  ;;  %v4079_v21 = vpop.f32.mrb[12].mxu0 }
 0x1b2   : > { %v2209_v18 = vpack.c.bf16 %v2199_v13, %v2198_v12  ;;  %v4111_v40 = vadd.f32 %v4079_v21, %v5153_v25  ;;  %v2134_v60 = vpop.f32.mrb[13].mxu0 }
 0x1b3   : > { %v2208_v29 = vpack.c.bf16 %v2197_v50, %v2196_v17  ;;  %v4112_v44 = vadd.f32 %v2134_v60, %v5155_v43  ;;  %v4080_v20 = vpop.f32.mrb[14].mxu0 }
 0x1b4   : > { %v2186_v26 = vadd.f32 %v4111_v40, %v5164_v32  ;;  %v4113_v59 = vadd.f32 %v4080_v20, %v5157_v45  ;;  %v2137_v1 = vpop.f32.mrb[15].mxu0  ;;  %v5194_v45 = vpop.permute.xlu0 %2396 }
 0x1b5   : > { %v2184_v56 = vadd.f32 %v4112_v44, %v5164_v32  ;;  %v4114_v7 = vadd.f32 %v2137_v1, %v5159_v51  ;;  %4091 = vmatprep.mubr.msk.bf16.mxu1 %vm803_vm4, %v2208_v29  ;;  %v5196_v51 = vpop.permute.xlu1 %2400 }
 0x1b6   : > { %v2187_v24 = vadd.f32 %v4113_v59, %v5164_v32  ;;  %4092 = vmatmul.mubr.msk.bf16.gmra.mrb[24].mxu1 %vm803_vm4, %v2209_v18  ;;  %v2202_v2 = vmax.f32 %v2186_v26, 0.0 }
 0x1b7   : > { %v2185_v25 = vadd.f32 %v4114_v7, %v5164_v32  ;;  %v2200_v36 = vmax.f32 %v2184_v56, 0.0 }
 0x1b8   : > { %v2203_v43 = vmax.f32 %v2187_v24, 0.0  ;;  %v5198_v41 = vpop.permute.xlu0 %2398 }
 0x1b9   : > { %v2201_v58 = vmax.f32 %v2185_v25, 0.0  ;;  %v5200_v48 = vpop.permute.xlu1 %2402 }
 0x1ba   : > { %v2211_v55 = vpack.c.bf16 %v2203_v43, %v2202_v2 }
 0x1bb   : > { %v2210_v14 = vpack.c.bf16 %v2201_v58, %v2200_v36 }
 0x1bc   : > { %v5202_v37 = vpop.permute.xlu0 %2404 }
 0x1bd   : > { %4095 = vmatprep.mubr.msk.bf16.mxu1 %vm803_vm4, %v2210_v14  ;;  %v5204_v32 = vpop.permute.xlu1 %2406 }
 0x1be   : > { %4096 = vmatmul.mubr.msk.bf16.gmra.mrb[28].mxu1 %vm803_vm4, %v2211_v55 }
 0x1c0   : > { %v5206_v38 = vpop.permute.xlu0 %2408 }
 0x1c1   : > { %v5208_v49 = vpop.permute.xlu1 %2410 }
 0x1c4   : > { %v5210_v4 = vpop.permute.xlu0 %2412 }
 0x1c5   : > { %v5212_v52 = vpop.permute.xlu1 %2414 }
 0x1c8   : > { %v5214_v53 = vpop.permute.xlu0 %2416 }
 0x1c9   : > { %v5216_v23 = vpop.permute.xlu1 %2418 }
 0x1cc   : > { %v5218_v47 = vpop.permute.xlu0 %2420 }
 0x1cd   : > { %5869 = vst [vmem:[#allocation8_spill] sm:$0xff] %v5218_v47  ;;  %v5225_v46 = vpop.permute.xlu1 %2422 }
 0x1ce   : > { %5870 = vst [vmem:[#allocation9_spill] sm:$0xff] %v5225_v46 }
 0x1d0   : > { %v5230_v33 = vpop.permute.xlu0 %2424 }
 0x1d1   : > { %v5247_v63 = vpop.permute.xlu1 %2426 }
 0x1d4   : > { %v5251_v9 = vpop.permute.xlu0 %2460 }
 0x1d5   : > { %v5270_v1 = vpop.permute.xlu1 %2462 }
 0x1d8   : > { %v5273_v25 = vpop.permute.xlu0 %2464 }
 0x279   : > { %v4085_v54 = vpop.f32.mrb[16].mxu1 }
 0x27a   : > { %v5228_v42 = vadd.f32 %v4085_v54, %v5223_v19  ;;  %v2285_v6 = vpop.f32.mrb[17].mxu1 }
 0x27b   : > { %v5233_v31 = vadd.f32 %v5223_v19, %v2285_v6  ;;  %v4086_v35 = vpop.f32.mrb[18].mxu1 }
 0x27c   : > { %v2350_v39 = vmin.f32 %v5228_v42, 4.1351666  ;;  %v2750_v34 = vsub.f32 0.0, %v5228_v42  ;;  %v5238_v28 = vadd.f32 %v4086_v35, %v5223_v19  ;;  %v2288_v8 = vpop.f32.mrb[19].mxu1 }
 0x27d   : > { %v2348_v11 = vmin.f32 %v5233_v31, 4.1351666  ;;  %v2748_v15 = vsub.f32 0.0, %v5233_v31  ;;  %v5243_v57 = vadd.f32 %v5223_v19, %v2288_v8 }
 0x27e   : > { %v2528_v22 = vmul.f32 1.442695, %v2350_v39  ;;  %v2768_v30 = vmul.f32 1.442695, %v2750_v34  ;;  %v2351_v61 = vmin.f32 %v5238_v28, 4.1351666 }
 0x27f   : > { %v2524_v62 = vmul.f32 1.442695, %v2348_v11  ;;  %v2764_v3 = vmul.f32 1.442695, %v2748_v15  ;;  %v2751_v27 = vsub.f32 0.0, %v5238_v28  ;;  %v2749_v16 = vsub.f32 0.0, %v5243_v57 }
 0x280   : > { %4302 = vpow2.f32 %v2528_v22  ;;  %v2530_v0 = vmul.f32 1.442695, %v2351_v61  ;;  %v2349_v5 = vmin.f32 %v5243_v57, 4.1351666  ;;  %v5289_v61 = vpop.permute.xlu1 %2466 }
 0x281   : > { %4304 = vpow2.f32 %v2768_v30  ;;  %v2770_v10 = vmul.f32 1.442695, %v2751_v27  ;;  %v4089_v12 = vpop.f32.mrb[20].mxu1  ;;  %v2766_v21 = vmul.f32 1.442695, %v2749_v16  ;;  %v5292_v16 = vpop.permute.xlu0 %2468 }
 0x282   : > { %4306 = vpow2.f32 %v2524_v62  ;;  %v2526_v13 = vmul.f32 1.442695, %v2349_v5  ;;  %v5257_v17 = vadd.f32 %v4089_v12, %v5223_v19  ;;  %v2301_v50 = vpop.f32.mrb[21].mxu1 }
 0x283   : > { %4308 = vpow2.f32 %v2764_v3  ;;  %v5260_v18 = vadd.f32 %v5223_v19, %v2301_v50  ;;  %v4090_v40 = vpop.f32.mrb[22].mxu1 }
 0x284   : > { %4310 = vpow2.f32 %v2530_v0  ;;  %v2354_v60 = vmin.f32 %v5257_v17, 4.1351666  ;;  %v2754_v29 = vsub.f32 0.0, %v5257_v17  ;;  %v5265_v44 = vadd.f32 %v4090_v40, %v5223_v19  ;;  %v2304_v20 = vpop.f32.mrb[23].mxu1 }
 0x285   : > { %4312 = vpow2.f32 %v2770_v10  ;;  %v2352_v26 = vmin.f32 %v5260_v18, 4.1351666  ;;  %v2752_v59 = vsub.f32 0.0, %v5260_v18  ;;  %v5277_v55 = vadd.f32 %v5223_v19, %v2304_v20 }
 0x286   : > { %4314 = vpow2.f32 %v2526_v13  ;;  %v2536_v56 = vmul.f32 1.442695, %v2354_v60  ;;  %v2776_v7 = vmul.f32 1.442695, %v2754_v29  ;;  %v2355_v24 = vmin.f32 %v5265_v44, 4.1351666 }
 0x287   : > { %4316 = vpow2.f32 %v2766_v21  ;;  %v2532_v2 = vmul.f32 1.442695, %v2352_v26  ;;  %v2772_v43 = vmul.f32 1.442695, %v2752_v59  ;;  %v2755_v36 = vsub.f32 0.0, %v5265_v44 }
 0x288   : > { %4318 = vpow2.f32 %v2536_v56  ;;  %v2538_v58 = vmul.f32 1.442695, %v2355_v24  ;;  %v2353_v35 = vmin.f32 %v5277_v55, 4.1351666  ;;  %v2753_v39 = vsub.f32 0.0, %v5277_v55 }
 0x289   : > { %4320 = vpow2.f32 %v2776_v7  ;;  %v2778_v14 = vmul.f32 1.442695, %v2755_v36  ;;  %v4093_v54 = vpop.f32.mrb[24].mxu1 }
 0x28a   : > { %v4303_v6 = vpop.eup %4302  ;;  %4322 = vpow2.f32 %v2532_v2  ;;  %v2317_v34 = vpop.f32.mrb[25].mxu1  ;;  %v2534_v62 = vmul.f32 1.442695, %v2353_v35  ;;  %v2774_v3 = vmul.f32 1.442695, %v2753_v39  ;;  %v5295_v10 = vadd.f32 %v4093_v54, %v5223_v19 }
 0x28b   : > { %v4305_v8 = vpop.eup %4304  ;;  %v2558_v11 = vmul.f32 %v4303_v6, %v5273_v25  ;;  %4324 = vpow2.f32 %v2772_v43  ;;  %v4094_v15 = vpop.f32.mrb[26].mxu1  ;;  %v5298_v12 = vadd.f32 %v5223_v19, %v2317_v34 }
 0x28c   : > { %v5287_v22 = vpop.eup %4306  ;;  %v2798_v30 = vadd.f32 1.0, %v4305_v8  ;;  %4326 = vpow2.f32 %v2538_v58  ;;  %v2320_v27 = vpop.f32.mrb[27].mxu1  ;;  %v5301_v21 = vadd.f32 %v4094_v15, %v5223_v19  ;;  %v2358_v29 = vmin.f32 %v5295_v10, 4.1351666 }
 0x28d   : > { %v4309_v0 = vpop.eup %4308  ;;  %v2574_v5 = vmul.f32 0.5, %v2558_v11  ;;  %4328 = vpow2.f32 %v2778_v14  ;;  %v2758_v20 = vsub.f32 0.0, %v5295_v10  ;;  %v2356_v56 = vmin.f32 %v5298_v12, 4.1351666  ;;  %v5316_v6 = vpop.permute.xlu1 %2470 }
 0x28e   : > { %v4311_v13 = vpop.eup %4310  ;;  %4330 = vrcp.f32 %v2798_v30  ;;  %v2796_v50 = vadd.f32 1.0, %v4309_v0  ;;  %v5314_v7 = vadd.f32 %v5223_v19, %v2320_v27  ;;  %v2544_v43 = vmul.f32 1.442695, %v2358_v29  ;;  %v5320_v8 = vpop.permute.xlu0 %2472 }
 0x28f   : > { %v4313_v40 = vpop.eup %4312  ;;  %v2559_v60 = vmul.f32 %v4311_v13, %v5289_v61  ;;  %4332 = vpow2.f32 %v2534_v62  ;;  %2608 = vrot.lane.b32.xlu0 %v2574_v5, %s4456_s18  ;;  %v2784_v36 = vmul.f32 1.442695, %v2758_v20  ;;  %v2756_v35 = vsub.f32 0.0, %v5298_v12 }
 0x290   : > { %v5307_v26 = vpop.eup %4314  ;;  %4334 = vrcp.f32 %v2796_v50  ;;  %v2799_v59 = vadd.f32 1.0, %v4313_v40  ;;  %v2540_v11 = vmul.f32 1.442695, %v2356_v56  ;;  %v2359_v15 = vmin.f32 %v5301_v21, 4.1351666 }
 0x291   : > { %v4317_v24 = vpop.eup %4316  ;;  %v2575_v2 = vmul.f32 0.5, %v2559_v60  ;;  %4336 = vpow2.f32 %v2774_v3  ;;  %v4097_v58 = vpop.f32.mrb[28].mxu1  ;;  %v2759_v27 = vsub.f32 0.0, %v5301_v21  ;;  %v2780_v13 = vmul.f32 1.442695, %v2756_v35 }
 0x292   : > { %v4319_v14 = vpop.eup %4318  ;;  %4338 = vrcp.f32 %v2799_v59  ;;  %v2797_v54 = vadd.f32 1.0, %v4317_v24  ;;  %v2333_v39 = vpop.f32.mrb[29].mxu1  ;;  %v2357_v50 = vmin.f32 %v5314_v7, 4.1351666  ;;  %v2546_v20 = vmul.f32 1.442695, %v2359_v15 }
 0x293   : > { %v4321_v34 = vpop.eup %4320  ;;  %4340 = vpow2.f32 %v2544_v43  ;;  %2610 = vrot.lane.b32.xlu1 %v2575_v2, %s4456_s18  ;;  %v4098_v30 = vpop.f32.mrb[30].mxu1  ;;  %v2757_v59 = vsub.f32 0.0, %v5314_v7  ;;  %v2786_v2 = vmul.f32 1.442695, %v2759_v27  ;;  %v5339_v43 = vadd.f32 %v4097_v58, %v5223_v19 }
 0x294   : > { %v5324_v62 = vpop.eup %4322  ;;  %4342 = vrcp.f32 %v2797_v54  ;;  %v2802_v3 = vadd.f32 1.0, %v4321_v34  ;;  %v5327_v0 = vpop.f32.mrb[31].mxu1  ;;  %v2542_v34 = vmul.f32 1.442695, %v2357_v50 }
 0x295   : > { %v4325_v5 = vpop.eup %4324  ;;  %4344 = vpow2.f32 %v2784_v36  ;;  %v5345_v54 = vpop.permute.xlu1 %2474  ;;  %v2782_v15 = vmul.f32 1.442695, %v2757_v59  ;;  %v2762_v27 = vsub.f32 0.0, %v5339_v43  ;;  %v2562_v59 = vmul.f32 %v4319_v14, %v5320_v8 }
 0x296   : > { %v5330_v40 = vpop.eup %4326  ;;  %4346 = vrcp.f32 %v2802_v3  ;;  %v2800_v60 = vadd.f32 1.0, %v4325_v5  ;;  %v5347_v35 = vpop.permute.xlu0 %2476  ;;  %v2362_v3 = vmin.f32 %v5339_v43, 4.1351666  ;;  %v5354_v5 = vadd.f32 %v5223_v19, %v2333_v39 }
 0x297   : > { %v4329_v29 = vpop.eup %4328  ;;  %4348 = vpow2.f32 %v2540_v11 }
 0x298   : > { %v4331_v56 = vpop.eup %4330  ;;  %4350 = vrcp.f32 %v2800_v60  ;;  %v2803_v24 = vadd.f32 1.0, %v4329_v29  ;;  %5871 = vst [vmem:[#allocation10_spill] sm:$0xff] %v5354_v5  ;;  %v2556_v60 = vmul.f32 %v5287_v22, %v5251_v9  ;;  %v2360_v39 = vmin.f32 %v5354_v5, 4.1351666 }
 0x299   : > { %v5341_v36 = vpop.eup %4332  ;;  %2831 = vst.msk [vmem:[%s5335_s22 + $0x10] sm:$0xff] %vm2828_vm9, %v4331_v56  ;;  %4352 = vpow2.f32 %v2780_v13  ;;  %v5359_v13 = vadd.f32 %v4098_v30, %v5223_v19  ;;  %v2552_v56 = vmul.f32 1.442695, %v2362_v3  ;;  %v5369_v14 = vpop.permute.xlu1 %2478 }
 0x29a   : > { %v4335_v11 = vpop.eup %4334  ;;  %4354 = vrcp.f32 %v2803_v24  ;;  %v2572_v30 = vmul.f32 0.5, %v2556_v60 }
 0x29b   : > { %v4337_v58 = vpop.eup %4336  ;;  %2829 = vst.msk [vmem:[%s5335_s22] sm:$0xff] %vm2828_vm9, %v4335_v11  ;;  %4356 = vpow2.f32 %v2546_v20  ;;  %v2792_v20 = vmul.f32 1.442695, %v2762_v27  ;;  %v2760_v11 = vsub.f32 0.0, %v5354_v5  ;;  %v2363_v46 = vmin.f32 %v5359_v13, 4.1351666 }
 0x29c   : > { %v4339_v50 = vpop.eup %4338  ;;  %v2801_v29 = vadd.f32 1.0, %v4337_v58  ;;  %4358 = vpow2.f32 %v2786_v2  ;;  %v5371_v2 = vpop.permute.xlu0 %2480  ;;  %v2763_v3 = vsub.f32 0.0, %v5359_v13  ;;  %2604 = vrot.lane.b32.xlu0 %v2572_v30, %s4456_s18  ;;  %v2563_v5 = vmul.f32 %v5330_v40, %v5345_v54 }
 0x29d   : > { %v4341_v24 = vpop.eup %4340  ;;  %2832 = vst.msk [vmem:[%s5335_s22 + $0x18] sm:$0xff] %vm2828_vm9, %v4339_v50  ;;  %4360 = vpow2.f32 %v2542_v34  ;;  %v2548_v34 = vmul.f32 1.442695, %v2360_v39  ;;  %v2578_v50 = vmul.f32 0.5, %v2562_v59  ;;  %v2788_v60 = vmul.f32 1.442695, %v2760_v11 }
 0x29e   : > { %v4343_v22 = vpop.eup %4342  ;;  %4362 = vrcp.f32 %v2801_v29  ;;  %v2557_v59 = vmul.f32 %v5307_v26, %v5270_v1 }
 0x29f   : > { %v4345_v58 = vpop.eup %4344  ;;  %2830 = vst.msk [vmem:[%s5335_s22 + $0x8] sm:$0xff] %vm2828_vm9, %v4343_v22  ;;  %4364 = vpow2.f32 %v2782_v15  ;;  %v2554_v22 = vmul.f32 1.442695, %v2363_v46  ;;  %v5379_v15 = vadd.f32 %v5223_v19, %v5327_v0  ;;  %v2794_v46 = vmul.f32 1.442695, %v2763_v3 }
 0x2a0   : > { %v4347_v27 = vpop.eup %4346  ;;  %v2806_v47 = vadd.f32 1.0, %v4345_v58  ;;  %4366 = vpow2.f32 %v2552_v56  ;;  %v2560_v56 = vmul.f32 %v5324_v62, %v5292_v16  ;;  %v2573_v40 = vmul.f32 0.5, %v2557_v59  ;;  %2616 = vrot.lane.b32.xlu0 %v2578_v50, %s4456_s18  ;;  %v5395_v62 = vpop.permute.xlu1 %2482 }
 0x2a1   : > { %v4349_v29 = vpop.eup %4348  ;;  %2835 = vst.msk [vmem:[%s5335_s22 + $0x30] sm:$0xff] %vm2828_vm9, %v4347_v27  ;;  %4368 = vpow2.f32 %v2792_v20  ;;  %v2361_v19 = vmin.f32 %v5379_v15, 4.1351666  ;;  %v2761_v0 = vsub.f32 0.0, %v5379_v15  ;;  %v5397_v58 = vpop.permute.xlu0 %2484  ;;  %v2579_v3 = vmul.f32 0.5, %v2563_v5 }
 0x2a2   : > { %v4351_v39 = vpop.eup %4350  ;;  %4370 = vrcp.f32 %v2806_v47  ;;  %v2566_v47 = vmul.f32 %v4341_v24, %v5371_v2  ;;  %2606 = vrot.lane.b32.xlu1 %v2573_v40, %s4456_s18  ;;  %v2576_v24 = vmul.f32 0.5, %v2560_v56 }
 0x2a3   : > { %v4353_v11 = vpop.eup %4352  ;;  %2833 = vst.msk [vmem:[%s5335_s22 + $0x20] sm:$0xff] %vm2828_vm9, %v4351_v39  ;;  %4372 = vpow2.f32 %v2548_v34  ;;  %v2790_v27 = vmul.f32 1.442695, %v2761_v0  ;;  %v2550_v50 = vmul.f32 1.442695, %v2361_v19 }
 0x2a4   : > { %v4355_v20 = vpop.eup %4354  ;;  %v2804_v30 = vadd.f32 1.0, %v4353_v11  ;;  %4374 = vpow2.f32 %v2788_v60  ;;  %v2582_v11 = vmul.f32 0.5, %v2566_v47  ;;  %2612 = vrot.lane.b32.xlu0 %v2576_v24, %s4456_s18 }
 0x2a5   : > { %v4357_v26 = vpop.eup %4356  ;;  %2836 = vst.msk [vmem:[%s5335_s22 + $0x38] sm:$0xff] %vm2828_vm9, %v4355_v20  ;;  %4376 = vpow2.f32 %v2554_v22  ;;  %v2561_v20 = vmul.f32 %v5341_v36, %v5316_v6  ;;  %v5410_v47 = vpop.permute.xlu0 %2488 }
 0x2a6   : > { %v4359_v34 = vpop.eup %4358  ;;  %4378 = vrcp.f32 %v2804_v30  ;;  %v2567_v56 = vmul.f32 %v4357_v26, %v5395_v62  ;;  %2618 = vrot.lane.b32.xlu1 %v2579_v3, %s4456_s18  ;;  %v5408_v30 = vpop.permute.xlu1 %2486 }
 0x2a7   : > { %v4361_v60 = vpop.eup %4360  ;;  %v2807_v39 = vadd.f32 1.0, %v4359_v34  ;;  %4380 = vpow2.f32 %v2794_v46  ;;  %v2564_v46 = vmul.f32 %v4349_v29, %v5347_v35  ;;  %v2577_v24 = vmul.f32 0.5, %v2561_v20 }
 0x2a8   : > { %v4363_v59 = vpop.eup %4362  ;;  %2624 = vrot.lane.b32.xlu0 %v2582_v11, %s4456_s18  ;;  %v2583_v29 = vmul.f32 0.5, %v2567_v56  ;;  %v2565_v20 = vmul.f32 %v4361_v60, %v5369_v14 }
 0x2a9   : > { %v4365_v22 = vpop.eup %4364  ;;  %2834 = vst.msk [vmem:[%s5335_s22 + $0x28] sm:$0xff] %vm2828_vm9, %v4363_v59  ;;  %4382 = vrcp.f32 %v2807_v39 }
 0x2aa   : > { %v4367_v5 = vpop.eup %4366  ;;  %v2805_v0 = vadd.f32 1.0, %v4365_v22  ;;  %4384 = vpow2.f32 %v2790_v27  ;;  %2614 = vrot.lane.b32.xlu1 %v2577_v24, %s4456_s18  ;;  %v2580_v27 = vmul.f32 0.5, %v2564_v46  ;;  %v5421_v11 = vpop.permute.xlu1 %2490  ;;  %v2581_v60 = vmul.f32 0.5, %v2565_v20 }
 0x2ab   : > { %v4369_v19 = vpop.eup %4368  ;;  %4386 = vpow2.f32 %v2550_v50  ;;  %v2570_v34 = vmul.f32 %v4367_v5, %v5410_v47  ;;  %v2446_v20 = vmul.f32 %v5196_v51, %v5228_v42 }
 0x2ac   : > { %v4371_v36 = vpop.eup %4370  ;;  %4388 = vrcp.f32 %v2805_v0  ;;  %v2810_v40 = vadd.f32 1.0, %v4369_v19  ;;  %2620 = vrot.lane.b32.xlu0 %v2580_v27, %s4456_s18 }
 0x2ad   : > { %v4373_v26 = vpop.eup %4372  ;;  %2839 = vst.msk [vmem:[%s5335_s22 + $0x50] sm:$0xff] %vm2828_vm9, %v4371_v36  ;;  %v2586_v22 = vmul.f32 0.5, %v2570_v34 }
 0x2ae   : > { %v4375_v3 = vpop.eup %4374  ;;  %4390 = vrcp.f32 %v2810_v40  ;;  %2626 = vrot.lane.b32.xlu1 %v2583_v29, %s4456_s18  ;;  %v2568_v46 = vmul.f32 %v4373_v26, %v5397_v58 }
 0x2af   : > { %v4377_v39 = vpop.eup %4376  ;;  %v2808_v50 = vadd.f32 1.0, %v4375_v3 }
 0x2b0   : > { %v4379_v59 = vpop.eup %4378  ;;  %v2571_v56 = vmul.f32 %v4377_v39, %v5421_v11  ;;  %2632 = vrot.lane.b32.xlu0 %v2586_v22, %s4456_s18  ;;  %v2584_v29 = vmul.f32 0.5, %v2568_v46 }
 0x2b1   : > { %v4381_v5 = vpop.eup %4380  ;;  %2837 = vst.msk [vmem:[%s5335_s22 + $0x40] sm:$0xff] %vm2828_vm9, %v4379_v59  ;;  %4392 = vrcp.f32 %v2808_v50 }
 0x2b2   : > { %v2811_v0 = vadd.f32 1.0, %v4381_v5  ;;  %v2587_v3 = vmul.f32 0.5, %v2571_v56  ;;  %2622 = vrot.lane.b32.xlu1 %v2581_v60, %s4456_s18  ;;  %v2510_v5 = vadd.f32 %v5273_v25, %v2446_v20 }
 0x2b3   : > { %v4383_v19 = vpop.eup %4382 }
 0x2b4   : > { %v4385_v36 = vpop.eup %4384  ;;  %2840 = vst.msk [vmem:[%s5335_s22 + $0x58] sm:$0xff] %vm2828_vm9, %v4383_v19  ;;  %4394 = vrcp.f32 %v2811_v0  ;;  %2628 = vrot.lane.b32.xlu0 %v2584_v29, %s4456_s18  ;;  %v2447_v0 = vmul.f32 %v5200_v48, %v5238_v28  ;;  %v2444_v48 = vmul.f32 %v5194_v45, %v5233_v31 }
 0x2b5   : > { %v4387_v40 = vpop.eup %4386  ;;  %v2809_v34 = vadd.f32 1.0, %v4385_v36 }
 0x2b6   : > { %v4389_v24 = vpop.eup %4388  ;;  %v2569_v27 = vmul.f32 %v4387_v40, %v5408_v30  ;;  %2634 = vrot.lane.b32.xlu1 %v2587_v3, %s4456_s18  ;;  %v2511_v19 = vadd.f32 %v5289_v61, %v2447_v0  ;;  %v2508_v25 = vadd.f32 %v5251_v9, %v2444_v48  ;;  %v2450_v9 = vmul.f32 %v5206_v38, %v5257_v17 }
 0x2b7   : > { %2838 = vst.msk [vmem:[%s5335_s22 + $0x48] sm:$0xff] %vm2828_vm9, %v4389_v24  ;;  %4396 = vrcp.f32 %v2809_v34 }
 0x2b8   : > { %v4391_v26 = vpop.eup %4390  ;;  %v2585_v50 = vmul.f32 0.5, %v2569_v27 }
 0x2b9   : > { %2843 = vst.msk [vmem:[%s5335_s22 + $0x70] sm:$0xff] %vm2828_vm9, %v4391_v26 }
 0x2ba   : > { %2630 = vrot.lane.b32.xlu1 %v2585_v50, %s4456_s18 }
 0x2bb   : > { %v4393_v39 = vpop.eup %4392 }
 0x2bc   : > { %2841 = vst.msk [vmem:[%s5335_s22 + $0x60] sm:$0xff] %vm2828_vm9, %v4393_v39  ;;  %v2445_v39 = vmul.f32 %v5198_v41, %v5243_v57 }
 0x2be   : > { %v4395_v59 = vpop.eup %4394 }
 0x2bf   : > { %2844 = vst.msk [vmem:[%s5335_s22 + $0x78] sm:$0xff] %vm2828_vm9, %v4395_v59 }
 0x2c1   : > { %v4397_v22 = vpop.eup %4396 }
 0x2c2   : > { %2842 = vst.msk [vmem:[%s5335_s22 + $0x68] sm:$0xff] %vm2828_vm9, %v4397_v22  ;;  %v2509_v22 = vadd.f32 %v5270_v1, %v2445_v39  ;;  %v2451_v1 = vmul.f32 %v5208_v49, %v5265_v44  ;;  %v2448_v49 = vmul.f32 %v5202_v37, %v5260_v18 }
 0x301   : > { %v2609_v56 = vpop.permute.xlu0 %2608 }
 0x302   : > { %v2654_v46 = vsub.f32 %v2510_v5, %v2609_v56  ;;  %v2702_v34 = vadd.f32 %v2609_v56, %v2510_v5  ;;  %v2514_v56 = vadd.f32 %v5320_v8, %v2450_v9 }
 0x304   : > { %v2670_v36 = vmax.f32 %v2654_v46, 0.0  ;;  %v2718_v29 = vmax.f32 %v2702_v34, 0.0 }
 0x305   : > { %v2611_v60 = vpop.permute.xlu1 %2610 }
 0x306   : > { %v2686_v40 = vmin.f32 %v2670_v36, 64.0  ;;  %v2655_v24 = vsub.f32 %v2511_v19, %v2611_v60  ;;  %v2703_v51 = vadd.f32 %v2611_v60, %v2511_v19  ;;  %v2734_v42 = vmin.f32 %v2718_v29, 64.0 }
 0x308   : > { %v2671_v3 = vmax.f32 %v2655_v24, 0.0  ;;  %2865 = vrot.lane.b32.xlu0 %v2686_v40, %s4454_s13  ;;  %v2719_v28 = vmax.f32 %v2703_v51, 0.0 }
 0x30a   : > { %v2687_v26 = vmin.f32 %v2671_v3, 64.0  ;;  %v2735_v61 = vmin.f32 %v2719_v28, 64.0  ;;  %v2449_v28 = vmul.f32 %v5204_v32, %v5277_v55  ;;  %v2454_v32 = vmul.f32 %v5214_v53, %v5295_v10 }
 0x30c   : > { %2867 = vrot.lane.b32.xlu1 %v2687_v26, %s4454_s13  ;;  %2929 = vrot.lane.b32.xlu0 %v2686_v40, %s4456_s18  ;;  %v2515_v40 = vadd.f32 %v5345_v54, %v2451_v1  ;;  %v2513_v39 = vadd.f32 %v5316_v6, %v2449_v28 }
 0x30e   : > { %v2605_v27 = vpop.permute.xlu0 %2604 }
 0x30f   : > { %v2652_v50 = vsub.f32 %v2508_v25, %v2605_v27  ;;  %v2700_v31 = vadd.f32 %v2605_v27, %v2508_v25 }
 0x310   : > { %2931 = vrot.lane.b32.xlu1 %v2687_v26, %s4456_s18  ;;  %3010 = vrot.lane.b32.xlu0 %v2734_v42, %s4454_s13 }
 0x311   : > { %v2668_v59 = vmax.f32 %v2652_v50, 0.0  ;;  %v2716_v41 = vmax.f32 %v2700_v31, 0.0 }
 0x312   : > { %v2617_v0 = vpop.permute.xlu0 %2616 }
 0x313   : > { %v2684_v45 = vmin.f32 %v2668_v59, 64.0  ;;  %v2732_v36 = vmin.f32 %v2716_v41, 64.0  ;;  %v2658_v60 = vsub.f32 %v2514_v56, %v2617_v0  ;;  %v2706_v29 = vadd.f32 %v2617_v0, %v2514_v56 }
 0x314   : > { %3012 = vrot.lane.b32.xlu1 %v2735_v61, %s4454_s13  ;;  %3075 = vrot.lane.b32.xlu0 %v2734_v42, %s4456_s18  ;;  %v2607_v20 = vpop.permute.xlu1 %2606  ;;  %v2512_v42 = vadd.f32 %v5292_v16, %v2448_v49 }
 0x315   : > { %v2653_v5 = vsub.f32 %v2509_v22, %v2607_v20  ;;  %v2701_v19 = vadd.f32 %v2607_v20, %v2509_v22  ;;  %v2674_v34 = vmax.f32 %v2658_v60, 0.0  ;;  %v2722_v26 = vmax.f32 %v2706_v29, 0.0 }
 0x316   : > { %v2613_v54 = vpop.permute.xlu0 %2612  ;;  %v2518_v22 = vadd.f32 %v5371_v2, %v2454_v32 }
 0x317   : > { %v2669_v57 = vmax.f32 %v2653_v5, 0.0  ;;  %v2717_v38 = vmax.f32 %v2701_v19, 0.0  ;;  %v2690_v3 = vmin.f32 %v2674_v34, 64.0  ;;  %v2738_v25 = vmin.f32 %v2722_v26, 64.0 }
 0x318   : > { %3077 = vrot.lane.b32.xlu1 %v2735_v61, %s4456_s18  ;;  %2861 = vrot.lane.b32.xlu0 %v2684_v45, %s4454_s13  ;;  %v2619_v17 = vpop.permute.xlu1 %2618  ;;  %v2656_v61 = vsub.f32 %v2512_v42, %v2613_v54  ;;  %v2455_v5 = vmul.f32 %v5216_v23, %v5301_v21  ;;  %v2452_v23 = vmul.f32 %v5210_v4, %v5298_v12 }
 0x319   : > { %v2685_v46 = vmin.f32 %v2669_v57, 64.0  ;;  %v2733_v8 = vmin.f32 %v2717_v38, 64.0  ;;  %v2659_v24 = vsub.f32 %v2515_v40, %v2619_v17  ;;  %v2707_v48 = vadd.f32 %v2619_v17, %v2515_v40 }
 0x31a   : > { %v2672_v27 = vmax.f32 %v2656_v61, 0.0  ;;  %v2625_v6 = vpop.permute.xlu0 %2624  ;;  %v2519_v0 = vadd.f32 %v5395_v62, %v2455_v5  ;;  %v2516_v17 = vadd.f32 %v5347_v35, %v2452_v23  ;;  %v2453_v40 = vmul.f32 %v5212_v52, %v5314_v7 }
 0x31b   : > { %v2675_v44 = vmax.f32 %v2659_v24, 0.0  ;;  %v2723_v37 = vmax.f32 %v2707_v48, 0.0  ;;  %v2662_v57 = vsub.f32 %v2518_v22, %v2625_v6  ;;  %v2710_v1 = vadd.f32 %v2625_v6, %v2518_v22 }
 0x31c   : > { %2925 = vrot.lane.b32.xlu0 %v2684_v45, %s4456_s18  ;;  %2863 = vrot.lane.b32.xlu1 %v2685_v46, %s4454_s13  ;;  %v2615_v18 = vpop.permute.xlu1 %2614  ;;  %v2688_v59 = vmin.f32 %v2672_v27, 64.0  ;;  %v2704_v45 = vadd.f32 %v2613_v54, %v2512_v42  ;;  %v2458_v52 = vmul.f32 %v5230_v33, %v5339_v43  ;;  %v2459_v42 = vmul.f32 %v5247_v63, %v5359_v13 }
 0x31d   : > { %v2691_v51 = vmin.f32 %v2675_v44, 64.0  ;;  %v2739_v50 = vmin.f32 %v2723_v37, 64.0  ;;  %v2657_v16 = vsub.f32 %v2513_v39, %v2615_v18  ;;  %v2705_v9 = vadd.f32 %v2615_v18, %v2513_v39  ;;  %v5873_v18 = vld [vmem:[#allocation8_spill] sm:$0xff] }
 0x31e   : > { %v2720_v31 = vmax.f32 %v2704_v45, 0.0  ;;  %v2678_v56 = vmax.f32 %v2662_v57, 0.0  ;;  %v2621_v62 = vpop.permute.xlu0 %2620  ;;  %v2522_v54 = vadd.f32 %v5410_v47, %v2458_v52  ;;  %v2523_v61 = vadd.f32 %v5421_v11, %v2459_v42  ;;  %v5872_v47 = vld [vmem:[#allocation10_spill] sm:$0xff]  ;;  %v5874_v11 = vld [vmem:[#allocation9_spill] sm:$0xff] }
 0x31f   : > { %v2673_v55 = vmax.f32 %v2657_v16, 0.0  ;;  %v2721_v53 = vmax.f32 %v2705_v9, 0.0  ;;  %v2708_v44 = vadd.f32 %v2621_v62, %v2516_v17  ;;  %v2456_v27 = vmul.f32 %v5873_v18, %v5872_v47 }
 0x320   : > { %3006 = vrot.lane.b32.xlu0 %v2732_v36, %s4454_s13  ;;  %2927 = vrot.lane.b32.xlu1 %v2685_v46, %s4456_s18  ;;  %v2736_v41 = vmin.f32 %v2720_v31, 64.0  ;;  %v2627_v10 = vpop.permute.xlu1 %2626  ;;  %v2694_v19 = vmin.f32 %v2678_v56, 64.0  ;;  %v2457_v32 = vmul.f32 %v5874_v11, %v5379_v15 }
 0x321   : > { %v2689_v20 = vmin.f32 %v2673_v55, 64.0  ;;  %v2737_v2 = vmin.f32 %v2721_v53, 64.0  ;;  %v2663_v46 = vsub.f32 %v2519_v0, %v2627_v10  ;;  %v2711_v38 = vadd.f32 %v2627_v10, %v2519_v0 }
 0x322   : > { %v2724_v26 = vmax.f32 %v2708_v44, 0.0  ;;  %v2520_v45 = vadd.f32 %v5397_v58, %v2456_v27 }
 0x323   : > { %v2679_v21 = vmax.f32 %v2663_v46, 0.0  ;;  %v2727_v4 = vmax.f32 %v2711_v38, 0.0 }
 0x324   : > { %3071 = vrot.lane.b32.xlu0 %v2732_v36, %s4456_s18  ;;  %3008 = vrot.lane.b32.xlu1 %v2733_v8, %s4454_s13  ;;  %v2726_v36 = vmax.f32 %v2710_v1, 0.0  ;;  %v2623_v12 = vpop.permute.xlu1 %2622  ;;  %v2740_v28 = vmin.f32 %v2724_v26, 64.0 }
 0x325   : > { %v2695_v60 = vmin.f32 %v2679_v21, 64.0  ;;  %v2743_v29 = vmin.f32 %v2727_v4, 64.0 }
 0x326   : > { %v2742_v34 = vmin.f32 %v2726_v36, 64.0 }
 0x328   : > { %2873 = vrot.lane.b32.xlu0 %v2690_v3, %s4454_s13  ;;  %3073 = vrot.lane.b32.xlu1 %v2733_v8, %s4456_s18  ;;  %v2660_v8 = vsub.f32 %v2516_v17, %v2621_v62  ;;  %v2635_v43 = vpop.permute.xlu1 %2634 }
 0x329   : > { %v2715_v22 = vadd.f32 %v2635_v43, %v2523_v61 }
 0x32a   : > { %v2676_v24 = vmax.f32 %v2660_v8, 0.0 }
 0x32b   : > { %v2731_v58 = vmax.f32 %v2715_v22, 0.0 }
 0x32c   : > { %2937 = vrot.lane.b32.xlu0 %v2690_v3, %s4456_s18  ;;  %2875 = vrot.lane.b32.xlu1 %v2691_v51, %s4454_s13  ;;  %v2517_v3 = vadd.f32 %v5369_v14, %v2453_v40  ;;  %v2692_v49 = vmin.f32 %v2676_v24, 64.0  ;;  %v2633_v14 = vpop.permute.xlu0 %2632 }
 0x32d   : > { %v2714_v13 = vadd.f32 %v2633_v14, %v2522_v54  ;;  %v2747_v10 = vmin.f32 %v2731_v58, 64.0 }
 0x32e   : > { %v2661_v35 = vsub.f32 %v2517_v3, %v2623_v12  ;;  %v2709_v48 = vadd.f32 %v2623_v12, %v2517_v3 }
 0x32f   : > { %v2730_v55 = vmax.f32 %v2714_v13, 0.0 }
 0x330   : > { %3018 = vrot.lane.b32.xlu0 %v2738_v25, %s4454_s13  ;;  %2939 = vrot.lane.b32.xlu1 %v2691_v51, %s4456_s18  ;;  %v2677_v7 = vmax.f32 %v2661_v35, 0.0  ;;  %v2725_v33 = vmax.f32 %v2709_v48, 0.0  ;;  %v2629_v16 = vpop.permute.xlu0 %2628 }
 0x331   : > { %v2664_v31 = vsub.f32 %v2520_v45, %v2629_v16  ;;  %v2746_v9 = vmin.f32 %v2730_v55, 64.0  ;;  %v2712_v53 = vadd.f32 %v2629_v16, %v2520_v45 }
 0x332   : > { %v2693_v51 = vmin.f32 %v2677_v7, 64.0  ;;  %v2741_v39 = vmin.f32 %v2725_v33, 64.0 }
 0x333   : > { %v2680_v5 = vmax.f32 %v2664_v31, 0.0  ;;  %v2728_v56 = vmax.f32 %v2712_v53, 0.0 }
 0x334   : > { %3083 = vrot.lane.b32.xlu0 %v2738_v25, %s4456_s18  ;;  %3020 = vrot.lane.b32.xlu1 %v2739_v50, %s4454_s13  ;;  %v2666_v25 = vsub.f32 %v2522_v54, %v2633_v14 }
 0x335   : > { %v2696_v15 = vmin.f32 %v2680_v5, 64.0 }
 0x336   : > { %v2682_v37 = vmax.f32 %v2666_v25, 0.0 }
 0x338   : > { %2869 = vrot.lane.b32.xlu0 %v2688_v59, %s4454_s13  ;;  %3085 = vrot.lane.b32.xlu1 %v2739_v50, %s4456_s18  ;;  %v2667_v50 = vsub.f32 %v2523_v61, %v2635_v43  ;;  %v2698_v63 = vmin.f32 %v2682_v37, 64.0 }
 0x33c   : > { %2933 = vrot.lane.b32.xlu0 %v2688_v59, %s4456_s18  ;;  %2871 = vrot.lane.b32.xlu1 %v2689_v20, %s4454_s13  ;;  %v2683_v59 = vmax.f32 %v2667_v50, 0.0 }
 0x33e   : > { %v2699_v6 = vmin.f32 %v2683_v59, 64.0 }
 0x340   : > { %3014 = vrot.lane.b32.xlu0 %v2736_v41, %s4454_s13  ;;  %2935 = vrot.lane.b32.xlu1 %v2689_v20, %s4456_s18  ;;  %v2631_v20 = vpop.permute.xlu1 %2630 }
 0x344   : > { %3079 = vrot.lane.b32.xlu0 %v2736_v41, %s4456_s18  ;;  %3016 = vrot.lane.b32.xlu1 %v2737_v2, %s4454_s13  ;;  %v2521_v41 = vadd.f32 %v5408_v30, %v2457_v32 }
 0x346   : > { %v2665_v57 = vsub.f32 %v2521_v41, %v2631_v20 }
 0x348   : > { %2881 = vrot.lane.b32.xlu0 %v2694_v19, %s4454_s13  ;;  %3081 = vrot.lane.b32.xlu1 %v2737_v2, %s4456_s18  ;;  %v2681_v0 = vmax.f32 %v2665_v57, 0.0  ;;  %v2713_v2 = vadd.f32 %v2631_v20, %v2521_v41 }
 0x34a   : > { %v2697_v30 = vmin.f32 %v2681_v0, 64.0  ;;  %v2729_v1 = vmax.f32 %v2713_v2, 0.0 }
 0x34c   : > { %2945 = vrot.lane.b32.xlu0 %v2694_v19, %s4456_s18  ;;  %2883 = vrot.lane.b32.xlu1 %v2695_v60, %s4454_s13  ;;  %v2744_v19 = vmin.f32 %v2728_v56, 64.0  ;;  %v2745_v36 = vmin.f32 %v2729_v1, 64.0 }
 0x350   : > { %3026 = vrot.lane.b32.xlu0 %v2742_v34, %s4454_s13  ;;  %2947 = vrot.lane.b32.xlu1 %v2695_v60, %s4456_s18 }
 0x354   : > { %3091 = vrot.lane.b32.xlu0 %v2742_v34, %s4456_s18  ;;  %3028 = vrot.lane.b32.xlu1 %v2743_v29, %s4454_s13 }
 0x358   : > { %2877 = vrot.lane.b32.xlu0 %v2692_v49, %s4454_s13  ;;  %3093 = vrot.lane.b32.xlu1 %v2743_v29, %s4456_s18 }
 0x35c   : > { %2941 = vrot.lane.b32.xlu0 %v2692_v49, %s4456_s18  ;;  %2879 = vrot.lane.b32.xlu1 %v2693_v51, %s4454_s13 }
 0x360   : > { %3022 = vrot.lane.b32.xlu0 %v2740_v28, %s4454_s13  ;;  %2943 = vrot.lane.b32.xlu1 %v2693_v51, %s4456_s18 }
 0x364   : > { %3087 = vrot.lane.b32.xlu0 %v2740_v28, %s4456_s18  ;;  %3024 = vrot.lane.b32.xlu1 %v2741_v39, %s4454_s13 }
 0x368   : > { %2889 = vrot.lane.b32.xlu0 %v2698_v63, %s4454_s13  ;;  %3089 = vrot.lane.b32.xlu1 %v2741_v39, %s4456_s18 }
 0x36c   : > { %2953 = vrot.lane.b32.xlu0 %v2698_v63, %s4456_s18  ;;  %2891 = vrot.lane.b32.xlu1 %v2699_v6, %s4454_s13 }
 0x370   : > { %3034 = vrot.lane.b32.xlu0 %v2746_v9, %s4454_s13  ;;  %2955 = vrot.lane.b32.xlu1 %v2699_v6, %s4456_s18 }
 0x374   : > { %2885 = vrot.lane.b32.xlu0 %v2696_v15, %s4454_s13  ;;  %3036 = vrot.lane.b32.xlu1 %v2747_v10, %s4454_s13 }
 0x378   : > { %2949 = vrot.lane.b32.xlu0 %v2696_v15, %s4456_s18  ;;  %2887 = vrot.lane.b32.xlu1 %v2697_v30, %s4454_s13 }
 0x37a   : > { %v2866_v46 = vpop.permute.xlu0 %2865 }
 0x37b   : > { %2911 = vst.msk [vmem:[%s5550_s30 + $0x10] sm:$0xff] %vm2828_vm9, %v2866_v46 }
 0x37c   : > { %3030 = vrot.lane.b32.xlu0 %v2744_v19, %s4454_s13  ;;  %2951 = vrot.lane.b32.xlu1 %v2697_v30, %s4456_s18 }
 0x37e   : > { %v2868_v23 = vpop.permute.xlu1 %2867  ;;  %v2930_v21 = vpop.permute.xlu0 %2929 }
 0x37f   : > { %2912 = vst.msk [vmem:[%s5550_s30 + $0x18] sm:$0xff] %vm2828_vm9, %v2868_v23  ;;  %3776 = vst.msk [vmem:[%s5550_s30 + $0x90] sm:$0xff] %vm2828_vm9, %v2930_v21 }
 0x380   : > { %3095 = vrot.lane.b32.xlu0 %v2744_v19, %s4456_s18  ;;  %3032 = vrot.lane.b32.xlu1 %v2745_v36, %s4454_s13  ;;  %s3824_s13 = sshll.u32 (%p4553_p5), %s4440_s12, 7 }
 0x381   : > { %s3158_s20 = sadd.s32 (%p4553_p5), %s3824_s13, %s5254_s17 }
 0x382   : > { %v2932_v62 = vpop.permute.xlu1 %2931  ;;  %v3011_v60 = vpop.permute.xlu0 %3010  ;;  %s3825_s14 = sshll.u32 (%p4553_p5), %s3158_s20, 3 }
 0x383   : > { %3777 = vst.msk [vmem:[%s5550_s30 + $0x98] sm:$0xff] %vm2828_vm9, %v2932_v62  ;;  %3792 = vst.msk [vmem:[%s5550_s30 + $0x110] sm:$0xff] %vm2828_vm9, %v3011_v60  ;;  %s5703_s11 = scalar_lea.vmem (%p4553_p5), %s5854_s9, %s3825_s14 }
 0x384   : > { %3099 = vrot.lane.b32.xlu0 %v2746_v9, %s4456_s18  ;;  %3097 = vrot.lane.b32.xlu1 %v2745_v36, %s4456_s18  ;;  %v3318_v36 = vld [vmem:[%s5550_s30 + $0x10] sm:$0xff] (%p4553_p5) }
 0x385   : > { %3319 = vst [vmem:[%s5703_s11 + $0x10] sm:$0xff] (%p4553_p5), %v3318_v36 }
 0x386   : > { %v3013_v38 = vpop.permute.xlu1 %3012  ;;  %v3076_v17 = vpop.permute.xlu0 %3075  ;;  %v3320_v62 = vld [vmem:[%s5550_s30 + $0x18] sm:$0xff] (%p4553_p5) }
 0x387   : > { %3793 = vst.msk [vmem:[%s5550_s30 + $0x118] sm:$0xff] %vm2828_vm9, %v3013_v38  ;;  %3808 = vst.msk [vmem:[%s5550_s30 + $0x190] sm:$0xff] %vm2828_vm9, %v3076_v17 }
 0x388   : > { %3101 = vrot.lane.b32.xlu1 %v2747_v10, %s4456_s18  ;;  %3321 = vst [vmem:[%s5703_s11 + $0x18] sm:$0xff] (%p4553_p5), %v3320_v62 }
 0x38a   : > { %v3078_v40 = vpop.permute.xlu1 %3077  ;;  %v2862_v34 = vpop.permute.xlu0 %2861 }
 0x38b   : > { %3809 = vst.msk [vmem:[%s5550_s30 + $0x198] sm:$0xff] %vm2828_vm9, %v3078_v40  ;;  %2909 = vst.msk [vmem:[%s5550_s30] sm:$0xff] %vm2828_vm9, %v2862_v34 }
 0x38e   : > { %v2926_v8 = vpop.permute.xlu0 %2925  ;;  %v2864_v4 = vpop.permute.xlu1 %2863 }
 0x38f   : > { %3774 = vst.msk [vmem:[%s5550_s30 + $0x80] sm:$0xff] %vm2828_vm9, %v2926_v8  ;;  %2910 = vst.msk [vmem:[%s5550_s30 + $0x8] sm:$0xff] %vm2828_vm9, %v2864_v4 }
 0x392   : > { %v3007_v12 = vpop.permute.xlu0 %3006  ;;  %v2928_v24 = vpop.permute.xlu1 %2927  ;;  %v3314_v23 = vld [vmem:[%s5550_s30] sm:$0xff] (%p4553_p5) }
 0x393   : > { %3790 = vst.msk [vmem:[%s5550_s30 + $0x100] sm:$0xff] %vm2828_vm9, %v3007_v12  ;;  %3775 = vst.msk [vmem:[%s5550_s30 + $0x88] sm:$0xff] %vm2828_vm9, %v2928_v24 }
 0x394   : > { %3315 = vst [vmem:[%s5703_s11] sm:$0xff] (%p4553_p5), %v3314_v23 }
 0x396   : > { %v3072_v3 = vpop.permute.xlu0 %3071  ;;  %v3009_v29 = vpop.permute.xlu1 %3008  ;;  %v3316_v21 = vld [vmem:[%s5550_s30 + $0x8] sm:$0xff] (%p4553_p5) }
 0x397   : > { %3806 = vst.msk [vmem:[%s5550_s30 + $0x180] sm:$0xff] %vm2828_vm9, %v3072_v3  ;;  %3791 = vst.msk [vmem:[%s5550_s30 + $0x108] sm:$0xff] %vm2828_vm9, %v3009_v29 }
 0x398   : > { %3317 = vst [vmem:[%s5703_s11 + $0x8] sm:$0xff] (%p4553_p5), %v3316_v21 }
 0x39a   : > { %v2874_v35 = vpop.permute.xlu0 %2873  ;;  %v3074_v49 = vpop.permute.xlu1 %3073 }
 0x39b   : > { %2915 = vst.msk [vmem:[%s5550_s30 + $0x30] sm:$0xff] %vm2828_vm9, %v2874_v35  ;;  %3807 = vst.msk [vmem:[%s5550_s30 + $0x188] sm:$0xff] %vm2828_vm9, %v3074_v49  ;;  %v3346_v49 = vld [vmem:[%s5550_s30 + $0x80] sm:$0xff] (%p4553_p5) }
 0x39c   : > { %3347 = vst [vmem:[%s5703_s11 + $0x100] sm:$0xff] (%p4553_p5), %v3346_v49 }
 0x39e   : > { %v2938_v44 = vpop.permute.xlu0 %2937  ;;  %v2876_v52 = vpop.permute.xlu1 %2875 }
 0x39f   : > { %3780 = vst.msk [vmem:[%s5550_s30 + $0xb0] sm:$0xff] %vm2828_vm9, %v2938_v44  ;;  %2916 = vst.msk [vmem:[%s5550_s30 + $0x38] sm:$0xff] %vm2828_vm9, %v2876_v52  ;;  %v3348_v44 = vld [vmem:[%s5550_s30 + $0x88] sm:$0xff] (%p4553_p5)  ;;  %v3350_v52 = vld [vmem:[%s5550_s30 + $0x90] sm:$0xff] (%p4553_p5) }
 0x3a0   : > { %3349 = vst [vmem:[%s5703_s11 + $0x108] sm:$0xff] (%p4553_p5), %v3348_v44  ;;  %3351 = vst [vmem:[%s5703_s11 + $0x110] sm:$0xff] (%p4553_p5), %v3350_v52 }
 0x3a2   : > { %v3019_v7 = vpop.permute.xlu0 %3018  ;;  %v2940_v26 = vpop.permute.xlu1 %2939  ;;  %v3326_v17 = vld [vmem:[%s5550_s30 + $0x30] sm:$0xff] (%p4553_p5) }
 0x3a3   : > { %3796 = vst.msk [vmem:[%s5550_s30 + $0x130] sm:$0xff] %vm2828_vm9, %v3019_v7  ;;  %3781 = vst.msk [vmem:[%s5550_s30 + $0xb8] sm:$0xff] %vm2828_vm9, %v2940_v26  ;;  %v3352_v7 = vld [vmem:[%s5550_s30 + $0x98] sm:$0xff] (%p4553_p5) }
 0x3a4   : > { %3327 = vst [vmem:[%s5703_s11 + $0x30] sm:$0xff] (%p4553_p5), %v3326_v17  ;;  %3353 = vst [vmem:[%s5703_s11 + $0x118] sm:$0xff] (%p4553_p5), %v3352_v7 }
 0x3a6   : > { %v3084_v14 = vpop.permute.xlu0 %3083  ;;  %v3021_v54 = vpop.permute.xlu1 %3020  ;;  %v3328_v40 = vld [vmem:[%s5550_s30 + $0x38] sm:$0xff] (%p4553_p5) }
 0x3a7   : > { %3812 = vst.msk [vmem:[%s5550_s30 + $0x1b0] sm:$0xff] %vm2828_vm9, %v3084_v14  ;;  %3797 = vst.msk [vmem:[%s5550_s30 + $0x138] sm:$0xff] %vm2828_vm9, %v3021_v54  ;;  %v3358_v54 = vld [vmem:[%s5550_s30 + $0xb0] sm:$0xff] (%p4553_p5) }
 0x3a8   : > { %3329 = vst [vmem:[%s5703_s11 + $0x38] sm:$0xff] (%p4553_p5), %v3328_v40  ;;  %3359 = vst [vmem:[%s5703_s11 + $0x130] sm:$0xff] (%p4553_p5), %v3358_v54 }
 0x3aa   : > { %v2870_v51 = vpop.permute.xlu0 %2869  ;;  %v3086_v48 = vpop.permute.xlu1 %3085 }
 0x3ab   : > { %2913 = vst.msk [vmem:[%s5550_s30 + $0x20] sm:$0xff] %vm2828_vm9, %v2870_v51  ;;  %3813 = vst.msk [vmem:[%s5550_s30 + $0x1b8] sm:$0xff] %vm2828_vm9, %v3086_v48  ;;  %v3360_v51 = vld [vmem:[%s5550_s30 + $0xb8] sm:$0xff] (%p4553_p5) }
 0x3ac   : > { %3361 = vst [vmem:[%s5703_s11 + $0x138] sm:$0xff] (%p4553_p5), %v3360_v51 }
 0x3ae   : > { %v2934_v42 = vpop.permute.xlu0 %2933  ;;  %v2872_v28 = vpop.permute.xlu1 %2871 }
 0x3af   : > { %3778 = vst.msk [vmem:[%s5550_s30 + $0xa0] sm:$0xff] %vm2828_vm9, %v2934_v42  ;;  %2914 = vst.msk [vmem:[%s5550_s30 + $0x28] sm:$0xff] %vm2828_vm9, %v2872_v28 }
 0x3b2   : > { %v3015_v25 = vpop.permute.xlu0 %3014  ;;  %v2936_v33 = vpop.permute.xlu1 %2935  ;;  %v3322_v60 = vld [vmem:[%s5550_s30 + $0x20] sm:$0xff] (%p4553_p5) }
 0x3b3   : > { %3794 = vst.msk [vmem:[%s5550_s30 + $0x120] sm:$0xff] %vm2828_vm9, %v3015_v25  ;;  %3779 = vst.msk [vmem:[%s5550_s30 + $0xa8] sm:$0xff] %vm2828_vm9, %v2936_v33 }
 0x3b4   : > { %3323 = vst [vmem:[%s5703_s11 + $0x20] sm:$0xff] (%p4553_p5), %v3322_v60 }
 0x3b6   : > { %v3080_v43 = vpop.permute.xlu0 %3079  ;;  %v3017_v61 = vpop.permute.xlu1 %3016  ;;  %v3324_v38 = vld [vmem:[%s5550_s30 + $0x28] sm:$0xff] (%p4553_p5)  ;;  %v3354_v26 = vld [vmem:[%s5550_s30 + $0xa0] sm:$0xff] (%p4553_p5) }
 0x3b7   : > { %3810 = vst.msk [vmem:[%s5550_s30 + $0x1a0] sm:$0xff] %vm2828_vm9, %v3080_v43  ;;  %3795 = vst.msk [vmem:[%s5550_s30 + $0x128] sm:$0xff] %vm2828_vm9, %v3017_v61 }
 0x3b8   : > { %3325 = vst [vmem:[%s5703_s11 + $0x28] sm:$0xff] (%p4553_p5), %v3324_v38  ;;  %3355 = vst [vmem:[%s5703_s11 + $0x120] sm:$0xff] (%p4553_p5), %v3354_v26 }
 0x3ba   : > { %v2882_v37 = vpop.permute.xlu0 %2881  ;;  %v3082_v47 = vpop.permute.xlu1 %3081  ;;  %v3356_v14 = vld [vmem:[%s5550_s30 + $0xa8] sm:$0xff] (%p4553_p5) }
 0x3bb   : > { %2919 = vst.msk [vmem:[%s5550_s30 + $0x50] sm:$0xff] %vm2828_vm9, %v2882_v37  ;;  %3811 = vst.msk [vmem:[%s5550_s30 + $0x1a8] sm:$0xff] %vm2828_vm9, %v3082_v47  ;;  %v3378_v47 = vld [vmem:[%s5550_s30 + $0x100] sm:$0xff] (%p4553_p5) }
 0x3bc   : > { %3357 = vst [vmem:[%s5703_s11 + $0x128] sm:$0xff] (%p4553_p5), %v3356_v14  ;;  %3379 = vst [vmem:[%s5703_s11 + $0x200] sm:$0xff] (%p4553_p5), %v3378_v47 }
 0x3be   : > { %v2946_v18 = vpop.permute.xlu0 %2945  ;;  %v2884_v27 = vpop.permute.xlu1 %2883 }
 0x3bf   : > { %3784 = vst.msk [vmem:[%s5550_s30 + $0xd0] sm:$0xff] %vm2828_vm9, %v2946_v18  ;;  %2920 = vst.msk [vmem:[%s5550_s30 + $0x58] sm:$0xff] %vm2828_vm9, %v2884_v27  ;;  %v3380_v18 = vld [vmem:[%s5550_s30 + $0x108] sm:$0xff] (%p4553_p5)  ;;  %v3382_v27 = vld [vmem:[%s5550_s30 + $0x110] sm:$0xff] (%p4553_p5) }
 0x3c0   : > { %3381 = vst [vmem:[%s5703_s11 + $0x208] sm:$0xff] (%p4553_p5), %v3380_v18  ;;  %3383 = vst [vmem:[%s5703_s11 + $0x210] sm:$0xff] (%p4553_p5), %v3382_v27 }
 0x3c2   : > { %v3027_v39 = vpop.permute.xlu0 %3026  ;;  %v2948_v50 = vpop.permute.xlu1 %2947  ;;  %v3334_v4 = vld [vmem:[%s5550_s30 + $0x50] sm:$0xff] (%p4553_p5) }
 0x3c3   : > { %3800 = vst.msk [vmem:[%s5550_s30 + $0x150] sm:$0xff] %vm2828_vm9, %v3027_v39  ;;  %3785 = vst.msk [vmem:[%s5550_s30 + $0xd8] sm:$0xff] %vm2828_vm9, %v2948_v50  ;;  %v3384_v39 = vld [vmem:[%s5550_s30 + $0x118] sm:$0xff] (%p4553_p5)  ;;  %v3386_v50 = vld [vmem:[%s5550_s30 + $0x120] sm:$0xff] (%p4553_p5) }
 0x3c4   : > { %3335 = vst [vmem:[%s5703_s11 + $0x50] sm:$0xff] (%p4553_p5), %v3334_v4  ;;  %3385 = vst [vmem:[%s5703_s11 + $0x218] sm:$0xff] (%p4553_p5), %v3384_v39 }
 0x3c5   : > { %3387 = vst [vmem:[%s5703_s11 + $0x220] sm:$0xff] (%p4553_p5), %v3386_v50 }
 0x3c6   : > { %v3092_v63 = vpop.permute.xlu0 %3091  ;;  %v3029_v13 = vpop.permute.xlu1 %3028  ;;  %v3336_v12 = vld [vmem:[%s5550_s30 + $0x58] sm:$0xff] (%p4553_p5)  ;;  %v3366_v28 = vld [vmem:[%s5550_s30 + $0xd0] sm:$0xff] (%p4553_p5) }
 0x3c7   : > { %3816 = vst.msk [vmem:[%s5550_s30 + $0x1d0] sm:$0xff] %vm2828_vm9, %v3092_v63  ;;  %3801 = vst.msk [vmem:[%s5550_s30 + $0x158] sm:$0xff] %vm2828_vm9, %v3029_v13  ;;  %v3388_v63 = vld [vmem:[%s5550_s30 + $0x128] sm:$0xff] (%p4553_p5)  ;;  %v3390_v13 = vld [vmem:[%s5550_s30 + $0x130] sm:$0xff] (%p4553_p5) }
 0x3c8   : > { %3337 = vst [vmem:[%s5703_s11 + $0x58] sm:$0xff] (%p4553_p5), %v3336_v12  ;;  %3367 = vst [vmem:[%s5703_s11 + $0x150] sm:$0xff] (%p4553_p5), %v3366_v28 }
 0x3c9   : > { %3389 = vst [vmem:[%s5703_s11 + $0x228] sm:$0xff] (%p4553_p5), %v3388_v63  ;;  %3391 = vst [vmem:[%s5703_s11 + $0x230] sm:$0xff] (%p4553_p5), %v3390_v13 }
 0x3ca   : > { %v2878_v16 = vpop.permute.xlu0 %2877  ;;  %v3094_v59 = vpop.permute.xlu1 %3093  ;;  %v3368_v25 = vld [vmem:[%s5550_s30 + $0xd8] sm:$0xff] (%p4553_p5) }
 0x3cb   : > { %2917 = vst.msk [vmem:[%s5550_s30 + $0x40] sm:$0xff] %vm2828_vm9, %v2878_v16  ;;  %3817 = vst.msk [vmem:[%s5550_s30 + $0x1d8] sm:$0xff] %vm2828_vm9, %v3094_v59  ;;  %v3392_v16 = vld [vmem:[%s5550_s30 + $0x138] sm:$0xff] (%p4553_p5) }
 0x3cc   : > { %3369 = vst [vmem:[%s5703_s11 + $0x158] sm:$0xff] (%p4553_p5), %v3368_v25  ;;  %3393 = vst [vmem:[%s5703_s11 + $0x238] sm:$0xff] (%p4553_p5), %v3392_v16 }
 0x3ce   : > { %v2942_v45 = vpop.permute.xlu0 %2941  ;;  %v2880_v11 = vpop.permute.xlu1 %2879 }
 0x3cf   : > { %3782 = vst.msk [vmem:[%s5550_s30 + $0xc0] sm:$0xff] %vm2828_vm9, %v2942_v45  ;;  %2918 = vst.msk [vmem:[%s5550_s30 + $0x48] sm:$0xff] %vm2828_vm9, %v2880_v11  ;;  %v3398_v11 = vld [vmem:[%s5550_s30 + $0x150] sm:$0xff] (%p4553_p5) }
 0x3d0   : > { %3399 = vst [vmem:[%s5703_s11 + $0x250] sm:$0xff] (%p4553_p5), %v3398_v11 }
 0x3d2   : > { %v3023_v32 = vpop.permute.xlu0 %3022  ;;  %v2944_v55 = vpop.permute.xlu1 %2943  ;;  %v3330_v34 = vld [vmem:[%s5550_s30 + $0x40] sm:$0xff] (%p4553_p5) }
 0x3d3   : > { %3798 = vst.msk [vmem:[%s5550_s30 + $0x140] sm:$0xff] %vm2828_vm9, %v3023_v32  ;;  %3783 = vst.msk [vmem:[%s5550_s30 + $0xc8] sm:$0xff] %vm2828_vm9, %v2944_v55  ;;  %v3400_v32 = vld [vmem:[%s5550_s30 + $0x158] sm:$0xff] (%p4553_p5) }
 0x3d4   : > { %3331 = vst [vmem:[%s5703_s11 + $0x40] sm:$0xff] (%p4553_p5), %v3330_v34  ;;  %3401 = vst [vmem:[%s5703_s11 + $0x258] sm:$0xff] (%p4553_p5), %v3400_v32 }
 0x3d6   : > { %v3088_v31 = vpop.permute.xlu0 %3087  ;;  %v3025_v6 = vpop.permute.xlu1 %3024  ;;  %v3332_v8 = vld [vmem:[%s5550_s30 + $0x48] sm:$0xff] (%p4553_p5)  ;;  %v3362_v48 = vld [vmem:[%s5550_s30 + $0xc0] sm:$0xff] (%p4553_p5) }
 0x3d7   : > { %3814 = vst.msk [vmem:[%s5550_s30 + $0x1c0] sm:$0xff] %vm2828_vm9, %v3088_v31  ;;  %3799 = vst.msk [vmem:[%s5550_s30 + $0x148] sm:$0xff] %vm2828_vm9, %v3025_v6 }
 0x3d8   : > { %3333 = vst [vmem:[%s5703_s11 + $0x48] sm:$0xff] (%p4553_p5), %v3332_v8  ;;  %3363 = vst [vmem:[%s5703_s11 + $0x140] sm:$0xff] (%p4553_p5), %v3362_v48 }
 0x3da   : > { %v2890_v22 = vpop.permute.xlu0 %2889  ;;  %v3090_v20 = vpop.permute.xlu1 %3089  ;;  %v3364_v42 = vld [vmem:[%s5550_s30 + $0xc8] sm:$0xff] (%p4553_p5)  ;;  %v3394_v59 = vld [vmem:[%s5550_s30 + $0x140] sm:$0xff] (%p4553_p5) }
 0x3db   : > { %2923 = vst.msk [vmem:[%s5550_s30 + $0x70] sm:$0xff] %vm2828_vm9, %v2890_v22  ;;  %3815 = vst.msk [vmem:[%s5550_s30 + $0x1c8] sm:$0xff] %vm2828_vm9, %v3090_v20  ;;  %v3410_v20 = vld [vmem:[%s5550_s30 + $0x180] sm:$0xff] (%p4553_p5) }
 0x3dc   : > { %3365 = vst [vmem:[%s5703_s11 + $0x148] sm:$0xff] (%p4553_p5), %v3364_v42  ;;  %3395 = vst [vmem:[%s5703_s11 + $0x240] sm:$0xff] (%p4553_p5), %v3394_v59 }
 0x3dd   : > { %3411 = vst [vmem:[%s5703_s11 + $0x300] sm:$0xff] (%p4553_p5), %v3410_v20 }
 0x3de   : > { %v2954_v9 = vpop.permute.xlu0 %2953  ;;  %v2892_v5 = vpop.permute.xlu1 %2891  ;;  %v3396_v45 = vld [vmem:[%s5550_s30 + $0x148] sm:$0xff] (%p4553_p5) }
 0x3df   : > { %3788 = vst.msk [vmem:[%s5550_s30 + $0xf0] sm:$0xff] %vm2828_vm9, %v2954_v9  ;;  %2924 = vst.msk [vmem:[%s5550_s30 + $0x78] sm:$0xff] %vm2828_vm9, %v2892_v5  ;;  %v3412_v9 = vld [vmem:[%s5550_s30 + $0x188] sm:$0xff] (%p4553_p5)  ;;  %v3414_v5 = vld [vmem:[%s5550_s30 + $0x190] sm:$0xff] (%p4553_p5) }
 0x3e0   : > { %3397 = vst [vmem:[%s5703_s11 + $0x248] sm:$0xff] (%p4553_p5), %v3396_v45  ;;  %3413 = vst [vmem:[%s5703_s11 + $0x308] sm:$0xff] (%p4553_p5), %v3412_v9 }
 0x3e1   : > { %3415 = vst [vmem:[%s5703_s11 + $0x310] sm:$0xff] (%p4553_p5), %v3414_v5 }
 0x3e2   : > { %v3035_v41 = vpop.permute.xlu0 %3034  ;;  %v2956_v58 = vpop.permute.xlu1 %2955  ;;  %v3342_v29 = vld [vmem:[%s5550_s30 + $0x70] sm:$0xff] (%p4553_p5) }
 0x3e3   : > { %3804 = vst.msk [vmem:[%s5550_s30 + $0x170] sm:$0xff] %vm2828_vm9, %v3035_v41  ;;  %3789 = vst.msk [vmem:[%s5550_s30 + $0xf8] sm:$0xff] %vm2828_vm9, %v2956_v58  ;;  %v3416_v41 = vld [vmem:[%s5550_s30 + $0x198] sm:$0xff] (%p4553_p5)  ;;  %v3418_v58 = vld [vmem:[%s5550_s30 + $0x1a0] sm:$0xff] (%p4553_p5) }
 0x3e4   : > { %3343 = vst [vmem:[%s5703_s11 + $0x70] sm:$0xff] (%p4553_p5), %v3342_v29  ;;  %3417 = vst [vmem:[%s5703_s11 + $0x318] sm:$0xff] (%p4553_p5), %v3416_v41 }
 0x3e5   : > { %3419 = vst [vmem:[%s5703_s11 + $0x320] sm:$0xff] (%p4553_p5), %v3418_v58 }
 0x3e6   : > { %v2886_v57 = vpop.permute.xlu0 %2885  ;;  %v3037_v15 = vpop.permute.xlu1 %3036  ;;  %v3344_v35 = vld [vmem:[%s5550_s30 + $0x78] sm:$0xff] (%p4553_p5)  ;;  %v3374_v61 = vld [vmem:[%s5550_s30 + $0xf0] sm:$0xff] (%p4553_p5) }
 0x3e7   : > { %2921 = vst.msk [vmem:[%s5550_s30 + $0x60] sm:$0xff] %vm2828_vm9, %v2886_v57  ;;  %3805 = vst.msk [vmem:[%s5550_s30 + $0x178] sm:$0xff] %vm2828_vm9, %v3037_v15  ;;  %v3420_v57 = vld [vmem:[%s5550_s30 + $0x1a8] sm:$0xff] (%p4553_p5)  ;;  %v3422_v15 = vld [vmem:[%s5550_s30 + $0x1b0] sm:$0xff] (%p4553_p5) }
 0x3e8   : > { %3345 = vst [vmem:[%s5703_s11 + $0x78] sm:$0xff] (%p4553_p5), %v3344_v35  ;;  %3375 = vst [vmem:[%s5703_s11 + $0x170] sm:$0xff] (%p4553_p5), %v3374_v61 }
 0x3e9   : > { %3421 = vst [vmem:[%s5703_s11 + $0x328] sm:$0xff] (%p4553_p5), %v3420_v57  ;;  %3423 = vst [vmem:[%s5703_s11 + $0x330] sm:$0xff] (%p4553_p5), %v3422_v15 }
 0x3ea   : > { %v2950_v53 = vpop.permute.xlu0 %2949  ;;  %v2888_v10 = vpop.permute.xlu1 %2887  ;;  %v3376_v37 = vld [vmem:[%s5550_s30 + $0xf8] sm:$0xff] (%p4553_p5)  ;;  %v3406_v6 = vld [vmem:[%s5550_s30 + $0x170] sm:$0xff] (%p4553_p5) }
 0x3eb   : > { %3786 = vst.msk [vmem:[%s5550_s30 + $0xe0] sm:$0xff] %vm2828_vm9, %v2950_v53  ;;  %2922 = vst.msk [vmem:[%s5550_s30 + $0x68] sm:$0xff] %vm2828_vm9, %v2888_v10  ;;  %v3424_v53 = vld [vmem:[%s5550_s30 + $0x1b8] sm:$0xff] (%p4553_p5)  ;;  %v3426_v10 = vld [vmem:[%s5550_s30 + $0x1c0] sm:$0xff] (%p4553_p5) }
 0x3ec   : > { %3377 = vst [vmem:[%s5703_s11 + $0x178] sm:$0xff] (%p4553_p5), %v3376_v37  ;;  %3407 = vst [vmem:[%s5703_s11 + $0x270] sm:$0xff] (%p4553_p5), %v3406_v6 }
 0x3ed   : > { %3425 = vst [vmem:[%s5703_s11 + $0x338] sm:$0xff] (%p4553_p5), %v3424_v53  ;;  %3427 = vst [vmem:[%s5703_s11 + $0x340] sm:$0xff] (%p4553_p5), %v3426_v10 }
 0x3ee   : > { %v3031_v0 = vpop.permute.xlu0 %3030  ;;  %v2952_v56 = vpop.permute.xlu1 %2951  ;;  %v3338_v24 = vld [vmem:[%s5550_s30 + $0x60] sm:$0xff] (%p4553_p5)  ;;  %v3408_v22 = vld [vmem:[%s5550_s30 + $0x178] sm:$0xff] (%p4553_p5) }
 0x3ef   : > { %3802 = vst.msk [vmem:[%s5550_s30 + $0x160] sm:$0xff] %vm2828_vm9, %v3031_v0  ;;  %3787 = vst.msk [vmem:[%s5550_s30 + $0xe8] sm:$0xff] %vm2828_vm9, %v2952_v56  ;;  %v3428_v0 = vld [vmem:[%s5550_s30 + $0x1c8] sm:$0xff] (%p4553_p5)  ;;  %v3430_v56 = vld [vmem:[%s5550_s30 + $0x1d0] sm:$0xff] (%p4553_p5) }
 0x3f0   : > { %3339 = vst [vmem:[%s5703_s11 + $0x60] sm:$0xff] (%p4553_p5), %v3338_v24  ;;  %3409 = vst [vmem:[%s5703_s11 + $0x278] sm:$0xff] (%p4553_p5), %v3408_v22 }
 0x3f1   : > { %3429 = vst [vmem:[%s5703_s11 + $0x348] sm:$0xff] (%p4553_p5), %v3428_v0  ;;  %3431 = vst [vmem:[%s5703_s11 + $0x350] sm:$0xff] (%p4553_p5), %v3430_v56 }
 0x3f2   : > { %v3096_v30 = vpop.permute.xlu0 %3095  ;;  %v3033_v2 = vpop.permute.xlu1 %3032  ;;  %v3340_v3 = vld [vmem:[%s5550_s30 + $0x68] sm:$0xff] (%p4553_p5)  ;;  %v3370_v33 = vld [vmem:[%s5550_s30 + $0xe0] sm:$0xff] (%p4553_p5) }
 0x3f3   : > { %3818 = vst.msk [vmem:[%s5550_s30 + $0x1e0] sm:$0xff] %vm2828_vm9, %v3096_v30  ;;  %3803 = vst.msk [vmem:[%s5550_s30 + $0x168] sm:$0xff] %vm2828_vm9, %v3033_v2  ;;  %v3432_v30 = vld [vmem:[%s5550_s30 + $0x1d8] sm:$0xff] (%p4553_p5) }
 0x3f4   : > { %3341 = vst [vmem:[%s5703_s11 + $0x68] sm:$0xff] (%p4553_p5), %v3340_v3  ;;  %3371 = vst [vmem:[%s5703_s11 + $0x160] sm:$0xff] (%p4553_p5), %v3370_v33 }
 0x3f5   : > { %3155 = sbr.rel (!%p4553_p5) target bundleno = 1028 (0x404), region = 60  ;;  %3433 = vst [vmem:[%s5703_s11 + $0x358] sm:$0xff] (%p4553_p5), %v3432_v30 }
 0x3f6   : > { %v3100_v46 = vpop.permute.xlu0 %3099  ;;  %v3098_v19 = vpop.permute.xlu1 %3097  ;;  %v3372_v43 = vld [vmem:[%s5550_s30 + $0xe8] sm:$0xff] (%p4553_p5)  ;;  %v3402_v55 = vld [vmem:[%s5550_s30 + $0x160] sm:$0xff] (%p4553_p5) }
 0x3f7   : > { %3820 = vst.msk [vmem:[%s5550_s30 + $0x1f0] sm:$0xff] %vm2828_vm9, %v3100_v46  ;;  %3819 = vst.msk [vmem:[%s5550_s30 + $0x1e8] sm:$0xff] %vm2828_vm9, %v3098_v19 }
 0x3f8   : > { %3373 = vst [vmem:[%s5703_s11 + $0x168] sm:$0xff] (%p4553_p5), %v3372_v43  ;;  %3403 = vst [vmem:[%s5703_s11 + $0x260] sm:$0xff] (%p4553_p5), %v3402_v55 }
 0x3fa   : > { %v3102_v1 = vpop.permute.xlu1 %3101  ;;  %v3404_v31 = vld [vmem:[%s5550_s30 + $0x168] sm:$0xff] (%p4553_p5)  ;;  %v3434_v2 = vld [vmem:[%s5550_s30 + $0x1e0] sm:$0xff] (%p4553_p5) }
 0x3fb   : > { %3821 = vst.msk [vmem:[%s5550_s30 + $0x1f8] sm:$0xff] %vm2828_vm9, %v3102_v1  ;;  %3405 = vst [vmem:[%s5703_s11 + $0x268] sm:$0xff] (%p4553_p5), %v3404_v31 }
 0x3fc   : > { %3435 = vst [vmem:[%s5703_s11 + $0x360] sm:$0xff] %v3434_v2 }
 0x3fe   : > { %v3436_v46 = vld [vmem:[%s5550_s30 + $0x1e8] sm:$0xff]  ;;  %v3438_v19 = vld [vmem:[%s5550_s30 + $0x1f0] sm:$0xff] }
 0x3ff   : > { %3437 = vst [vmem:[%s5703_s11 + $0x368] sm:$0xff] %v3436_v46  ;;  %3439 = vst [vmem:[%s5703_s11 + $0x370] sm:$0xff] %v3438_v19 }
 0x402   : > { %v3440_v1 = vld [vmem:[%s5550_s30 + $0x1f8] sm:$0xff] }
 0x403   : > { %3441 = vst [vmem:[%s5703_s11 + $0x378] sm:$0xff] %v3440_v1 }
 0x404 PF: > { %s20_s15 = sadd.s32 1, %s4452_s15   ;;  %s5875_s11 = sld [smem:[#allocation4_spill]] }
 0x405   : > { %p17_p13 = scmp.ge.s32.totalorder %s20_s15, 6   ;;  %s5876_s12 = sld [smem:[#allocation5_spill]] }
 0x406   : > { %s5877_s13 = sld [smem:[#allocation6_spill]]  ;;  %s5878_s14 = sld [smem:[#allocation7_spill]] }
 0x407   : > { %s5879_s30 = smov %s4432_s10  ;;  %s5880_s10 = smov %s4564_s24 }
 0x408   :  { %19 = sbr.rel (!%p17_p13) target bundleno = 4 (0x4), region = 154 }

</bundles_post_ra>
